<compile_context>
chip_gen: v6e
topology: v6e:2x2x1
jax: 0.10.0
libtpu: 0.0.40
codegen_flags: <defaults>
</compile_context>

<pallas_src>
import functools

import jax
import jax.numpy as jnp
from jax import lax
from jax.experimental import pallas as pl
from jax.experimental.pallas import tpu as pltpu


# ----------------------------- in-kernel helpers -----------------------------

def _layernorm(x, w, b, eps=1e-5):
    # LayerNorm over the last (embed) dim, biased variance, like torch.nn.LayerNorm.
    mu = jnp.mean(x, axis=-1, keepdims=True)
    xc = x - mu
    var = jnp.mean(xc * xc, axis=-1, keepdims=True)
    return xc * lax.rsqrt(var + eps) * w + b


def _gelu_exact(x):
    # torch.nn.GELU() default = exact erf formulation.
    return 0.5 * x * (1.0 + lax.erf(x * 0.7071067811865476))


# --------------------------------- kernel ------------------------------------

def mixer_kernel(x_ref, m_ref,
                 ln1w_ref, ln1b_ref, wv1_ref, bv1_ref, wv2_ref, bv2_ref,
                 ln2w_ref, ln2b_ref, wd1t_ref, bd1_ref, wd2t_ref, bd2_ref,
                 o_ref, *, depth, bt, V, D, Iv, Id, unroll):
    f32 = jnp.float32
    R = bt * V

    # Small row-vector params ((1, D)/(1, Id)); sublane broadcast is folded
    # into the adds that use them.
    ln1w = ln1w_ref[...]; ln1b = ln1b_ref[...]
    ln2w = ln2w_ref[...]; ln2b = ln2b_ref[...]
    bd1 = bd1_ref[...];   bd2 = bd2_ref[...]

    # View-mix weights / biases: hoist the small batch / lane broadcasts out of
    # the depth loop once (JAX does not CSE broadcast_in_dim).
    wv1b = jnp.broadcast_to(wv1_ref[...][None], (bt, Iv, V))   # (bt, Iv, V)
    wv2b = jnp.broadcast_to(wv2_ref[...][None], (bt, V, Iv))   # (bt, V, Iv)
    bv1r = jnp.broadcast_to(bv1_ref[...], (Iv, D))[None]       # (1, Iv, D)
    bv2r = jnp.broadcast_to(bv2_ref[...], (V, D))[None]        # (1, V, D)

    # masked_fill(mask == 0, 0): boolean mask, lane-broadcast once per grid step.
    mvalid = jnp.broadcast_to(m_ref[...].reshape(R, 1) != 0, (R, D))

    x0 = x_ref[...].astype(f32).reshape(R, D)

    def layer(x):
        # ---- view_PreNormResidual: LN -> masked_fill -> conv1d(V->Iv, k=1)
        #      -> GELU -> conv1d(Iv->V, k=1) -> + residual  (dropout p=0 -> id)
        h = jnp.where(mvalid, _layernorm(x, ln1w, ln1b), 0.0)       # (R, D)
        h3 = h.reshape(bt, V, D)         # free when V is a multiple of 8
        t = jnp.einsum('biv,bvd->bid', wv1b, h3,
                       preferred_element_type=f32) + bv1r           # (bt, Iv, D)
        t = _gelu_exact(t)
        y = jnp.einsum('bvi,bid->bvd', wv2b, t,
                       preferred_element_type=f32) + bv2r           # (bt, V, D)
        x = x + y.reshape(R, D)

        # ---- dim_PreNormResidual: LN -> Linear(D->Id) -> GELU -> Linear(Id->D)
        #      -> + residual. Big weights are read at the dot sites (no hoist).
        h2 = _layernorm(x, ln2w, ln2b)                               # (R, D)
        u = _gelu_exact(jnp.dot(h2, wd1t_ref[...],
                                preferred_element_type=f32) + bd1)   # (R, Id)
        return x + jnp.dot(u, wd2t_ref[...],
                           preferred_element_type=f32) + bd2

    if unroll:
        x = x0
        for _ in range(depth):          # shared-weight layer applied depth times
            x = layer(x)
    else:
        x = lax.fori_loop(0, depth, lambda _, xc: layer(xc), x0)

    o_ref[...] = x.reshape(bt, V, D).astype(o_ref.dtype)


# ------------------------------ tiling helpers --------------------------------

def _vmem_capacity_bytes():
    try:
        return int(pltpu.get_tpu_info().vmem_capacity_bytes)
    except Exception:
        return 64 << 20          # assume the smallest per-core VMEM (v7x)


def _working_set_bytes(bt, V, D, Iv, Id, io_bytes=4):
    R = bt * V
    act = R * D * 4                                   # resident f32 activation
    inter = (R * Id + bt * Iv * D + R * D) * 4        # GELU / view-mix intermediates
    io = 2 * 2 * (bt * V * D * io_bytes) + 2 * bt * V * io_bytes   # dbl-buffered x/out/mask
    w = (2 * D * Id + (2 * bt + 2) * Iv * V + Iv * D + V * D + 6 * D + 2 * Id) * 4
    return act + inter + io + w


def _pick_batch_tile(B, V, D, Iv, Id, budget_bytes, target_rows=512):
    divs = [d for d in range(1, B + 1) if B % d == 0]
    fitting = [d for d in divs
               if _working_set_bytes(d, V, D, Iv, Id) <= budget_bytes] or [1]
    # Prefer the smallest tile whose row count already amortizes per-step
    # overhead / fills the MXU (>= target_rows), keeping more grid steps for
    # pipelining and v7x megacore; within that prefer bt*V % 256 == 0.
    big = [d for d in fitting if d * V >= target_rows]
    if big:
        pool = [d for d in big if B // d >= 2] or big
        aligned = [d for d in pool if (d * V) % 256 == 0]
        return min(aligned) if aligned else min(pool)
    multi = [d for d in fitting if B // d >= 2]
    return max(multi) if multi else max(fitting)


# --------------------------------- wrapper -----------------------------------

def mlp_mixer_forward(x, mask, params, depth, batch_tile=None):
    B, V, D = x.shape
    Iv = params["wv1"].shape[0]
    Id = params["bd1"].shape[1]

    budget = int(_vmem_capacity_bytes() * 0.75)
    bt = batch_tile if batch_tile is not None else _pick_batch_tile(
        B, V, D, Iv, Id, budget)
    assert B % bt == 0

    # Mask stays un-broadcast: (B, V, 1). Kernel compares & lane-broadcasts once.
    m = mask.astype(x.dtype).reshape(B, V, 1)

    est = _working_set_bytes(bt, V, D, Iv, Id)
    vmem_limit = int(min(budget, max(32 << 20, int(est * 1.5))))

    unroll = (depth <= 4) and (bt * V <= 1024)

    full = lambda shape: pl.BlockSpec(shape, lambda i: (0, 0))
    grid_spec = pltpu.PrefetchScalarGridSpec(
        num_scalar_prefetch=0,
        grid=(B // bt,),
        in_specs=[
            pl.BlockSpec((bt, V, D), lambda i: (i, 0, 0)),   # x
            pl.BlockSpec((bt, V, 1), lambda i: (i, 0, 0)),   # mask (B, V, 1)
            full((1, D)), full((1, D)),                      # ln1 w, b
            full((Iv, V)), full((Iv, 1)),                    # view fn1 (Conv1d V->Iv)
            full((V, Iv)), full((V, 1)),                     # view fn2 (Conv1d Iv->V)
            full((1, D)), full((1, D)),                      # ln2 w, b
            full((D, Id)), full((1, Id)),                    # dim fn1 w^T, b
            full((Id, D)), full((1, D)),                     # dim fn2 w^T, b
        ],
        out_specs=pl.BlockSpec((bt, V, D), lambda i: (i, 0, 0)),
    )

    kernel = functools.partial(mixer_kernel, depth=depth, bt=bt, V=V, D=D,
                               Iv=Iv, Id=Id, unroll=unroll)
    call = pl.pallas_call(
        kernel,
        out_shape=jax.ShapeDtypeStruct((B, V, D), x.dtype),
        grid_spec=grid_spec,
        input_output_aliases={0: 0},     # output reuses x's HBM buffer
        compiler_params=pltpu.CompilerParams(
            dimension_semantics=("parallel",),
            vmem_limit_bytes=vmem_limit),
    )
    return call(x, m,
                params["ln1w"], params["ln1b"], params["wv1"], params["bv1"],
                params["wv2"], params["bv2"], params["ln2w"], params["ln2b"],
                params["wd1_t"], params["bd1"], params["wd2_t"], params["bd2"])


# ------------------------------- pure-JAX ref ---------------------------------

def _ref_layer(x, mask, p):
    def ln(v, w, b):
        mu = v.mean(-1, keepdims=True)
        var = ((v - mu) ** 2).mean(-1, keepdims=True)
        return (v - mu) / jnp.sqrt(var + 1e-5) * w + b

    def gelu(v):
        return 0.5 * v * (1.0 + jax.scipy.special.erf(v * 0.7071067811865476))

    h = ln(x, p["ln1w"][0], p["ln1b"][0])
    h = jnp.where(mask[:, :, None] == 0, 0.0, h)
    t = gelu(jnp.einsum("iv,bvd->bid", p["wv1"], h) + p["bv1"][None])
    x = x + jnp.einsum("vi,bid->bvd", p["wv2"], t) + p["bv2"][None]
    h2 = ln(x, p["ln2w"][0], p["ln2b"][0])
    u = gelu(h2 @ p["wd1_t"] + p["bd1"][0])
    return x + u @ p["wd2_t"] + p["bd2"][0]


def _ref_forward(x, mask, params, depth):
    for _ in range(depth):
        x = _ref_layer(x, mask, params)
    return x


# ----------------------------------- main -------------------------------------

if __name__ == "__main__":
    # Small shapes consistent with the module (view_num, embed_dim, view_inner_dim,
    # expansion_factor are constructor params; TPU-friendly small values).
    B, V, D = 2, 8, 128
    view_inner_dim = 32
    expansion_factor = 2
    depth = 3
    Iv, Id = view_inner_dim, D * expansion_factor

    key = jax.random.PRNGKey(0)
    ks = jax.random.split(key, 12)
    f32 = jnp.float32

    params = {
        "ln1w": jnp.ones((1, D), f32),
        "ln1b": jnp.zeros((1, D), f32),
        "wv1":  0.05 * jax.random.normal(ks[0], (Iv, V), f32),   # Conv1d(V->Iv, k=1) weight
        "bv1":  0.05 * jax.random.normal(ks[1], (Iv, 1), f32),
        "wv2":  0.05 * jax.random.normal(ks[2], (V, Iv), f32),   # Conv1d(Iv->V, k=1) weight
        "bv2":  0.05 * jax.random.normal(ks[3], (V, 1), f32),
        "ln2w": jnp.ones((1, D), f32),
        "ln2b": jnp.zeros((1, D), f32),
        "wd1_t": 0.05 * jax.random.normal(ks[4], (D, Id), f32),  # Linear(D->Id) weight^T
        "bd1":   0.05 * jax.random.normal(ks[5], (1, Id), f32),
        "wd2_t": 0.05 * jax.random.normal(ks[6], (Id, D), f32),  # Linear(Id->D) weight^T
        "bd2":   0.05 * jax.random.normal(ks[7], (1, D), f32),
    }

    x = jax.random.normal(ks[8], (B, V, D), f32)
    # mask: last view of batch 0 masked out, rest visible
    mask = jnp.ones((B, V), f32).at[0, V - 1].set(0.0)

    # Reference first (x is never reused after the aliased kernel call).
    ref = _ref_forward(x, mask, params, depth)

    fwd = jax.jit(functools.partial(mlp_mixer_forward, depth=depth))
    out = jax.block_until_ready(fwd(x, mask, params))

    assert out.shape == (B, V, D) and out.dtype == jnp.float32
    assert jnp.allclose(out, ref, rtol=1e-4, atol=1e-4), (
        float(jnp.max(jnp.abs(out - ref))))

    print("KERNEL_OK")
</pallas_src>

<mosaic_0001>
module attributes {stable_mosaic.version = 11 : i64} {
  func.func @mixer_kernel(%arg0: i32, %arg1: memref<1x8x128xf32, #tpu.memory_space<vmem>>, %arg2: memref<1x8x1xf32, #tpu.memory_space<vmem>>, %arg3: memref<1x128xf32, #tpu.memory_space<vmem>>, %arg4: memref<1x128xf32, #tpu.memory_space<vmem>>, %arg5: memref<32x8xf32, #tpu.memory_space<vmem>>, %arg6: memref<32x1xf32, #tpu.memory_space<vmem>>, %arg7: memref<8x32xf32, #tpu.memory_space<vmem>>, %arg8: memref<8x1xf32, #tpu.memory_space<vmem>>, %arg9: memref<1x128xf32, #tpu.memory_space<vmem>>, %arg10: memref<1x128xf32, #tpu.memory_space<vmem>>, %arg11: memref<128x256xf32, #tpu.memory_space<vmem>>, %arg12: memref<1x256xf32, #tpu.memory_space<vmem>>, %arg13: memref<256x128xf32, #tpu.memory_space<vmem>>, %arg14: memref<1x128xf32, #tpu.memory_space<vmem>>, %arg15: memref<1x8x128xf32, #tpu.memory_space<vmem>>) attributes {dimension_semantics = [#tpu.dimension_semantics<parallel>], iteration_bounds = array<i64: 2>, scalar_prefetch = 0 : i64, scratch_operands = 0 : i64, tpu.core_type = #tpu.core_type<tc>, window_params = [{transform_indices = @transform_0, window_bounds = array<i64: 1, 8, 128>}, {transform_indices = @transform_1, window_bounds = array<i64: 1, 8, 1>}, {pipeline_mode = #tpu.pipeline_mode<synchronous>, transform_indices = @transform_2, window_bounds = array<i64: 1, 128>}, {pipeline_mode = #tpu.pipeline_mode<synchronous>, transform_indices = @transform_3, window_bounds = array<i64: 1, 128>}, {pipeline_mode = #tpu.pipeline_mode<synchronous>, transform_indices = @transform_4, window_bounds = array<i64: 32, 8>}, {pipeline_mode = #tpu.pipeline_mode<synchronous>, transform_indices = @transform_5, window_bounds = array<i64: 32, 1>}, {pipeline_mode = #tpu.pipeline_mode<synchronous>, transform_indices = @transform_6, window_bounds = array<i64: 8, 32>}, {pipeline_mode = #tpu.pipeline_mode<synchronous>, transform_indices = @transform_7, window_bounds = array<i64: 8, 1>}, {pipeline_mode = #tpu.pipeline_mode<synchronous>, transform_indices = @transform_8, window_bounds = array<i64: 1, 128>}, {pipeline_mode = #tpu.pipeline_mode<synchronous>, transform_indices = @transform_9, window_bounds = array<i64: 1, 128>}, {pipeline_mode = #tpu.pipeline_mode<synchronous>, transform_indices = @transform_10, window_bounds = array<i64: 128, 256>}, {pipeline_mode = #tpu.pipeline_mode<synchronous>, transform_indices = @transform_11, window_bounds = array<i64: 1, 256>}, {pipeline_mode = #tpu.pipeline_mode<synchronous>, transform_indices = @transform_12, window_bounds = array<i64: 256, 128>}, {pipeline_mode = #tpu.pipeline_mode<synchronous>, transform_indices = @transform_13, window_bounds = array<i64: 1, 128>}, {transform_indices = @transform_14, window_bounds = array<i64: 1, 8, 128>}]} {
    %c0 = arith.constant 0 : index
    %c0_0 = arith.constant 0 : index
    %0 = vector.load %arg3[%c0, %c0_0] : memref<1x128xf32, #tpu.memory_space<vmem>>, vector<1x128xf32>
    %c0_1 = arith.constant 0 : index
    %c0_2 = arith.constant 0 : index
    %1 = vector.load %arg4[%c0_1, %c0_2] : memref<1x128xf32, #tpu.memory_space<vmem>>, vector<1x128xf32>
    %c0_3 = arith.constant 0 : index
    %c0_4 = arith.constant 0 : index
    %2 = vector.load %arg9[%c0_3, %c0_4] : memref<1x128xf32, #tpu.memory_space<vmem>>, vector<1x128xf32>
    %c0_5 = arith.constant 0 : index
    %c0_6 = arith.constant 0 : index
    %3 = vector.load %arg10[%c0_5, %c0_6] : memref<1x128xf32, #tpu.memory_space<vmem>>, vector<1x128xf32>
    %c0_7 = arith.constant 0 : index
    %c0_8 = arith.constant 0 : index
    %4 = vector.load %arg12[%c0_7, %c0_8] : memref<1x256xf32, #tpu.memory_space<vmem>>, vector<1x256xf32>
    %c0_9 = arith.constant 0 : index
    %c0_10 = arith.constant 0 : index
    %5 = vector.load %arg14[%c0_9, %c0_10] : memref<1x128xf32, #tpu.memory_space<vmem>>, vector<1x128xf32>
    %c0_11 = arith.constant 0 : index
    %c0_12 = arith.constant 0 : index
    %6 = vector.load %arg5[%c0_11, %c0_12] : memref<32x8xf32, #tpu.memory_space<vmem>>, vector<32x8xf32>
    %7 = vector.shape_cast %6 : vector<32x8xf32> to vector<1x32x8xf32>
    %c0_13 = arith.constant 0 : index
    %c0_14 = arith.constant 0 : index
    %8 = vector.load %arg7[%c0_13, %c0_14] : memref<8x32xf32, #tpu.memory_space<vmem>>, vector<8x32xf32>
    %9 = vector.shape_cast %8 : vector<8x32xf32> to vector<1x8x32xf32>
    %c0_15 = arith.constant 0 : index
    %c0_16 = arith.constant 0 : index
    %10 = vector.load %arg6[%c0_15, %c0_16] : memref<32x1xf32, #tpu.memory_space<vmem>>, vector<32x1xf32>
    %11 = vector.shape_cast %10 : vector<32x1xf32> to vector<32x1xf32>
    %12 = vector.broadcast %11 : vector<32x1xf32> to vector<32x128xf32>
    %13 = vector.shape_cast %12 : vector<32x128xf32> to vector<1x32x128xf32>
    %c0_17 = arith.constant 0 : index
    %c0_18 = arith.constant 0 : index
    %14 = vector.load %arg8[%c0_17, %c0_18] : memref<8x1xf32, #tpu.memory_space<vmem>>, vector<8x1xf32>
    %15 = vector.shape_cast %14 : vector<8x1xf32> to vector<8x1xf32>
    %16 = vector.broadcast %15 : vector<8x1xf32> to vector<8x128xf32>
    %17 = vector.shape_cast %16 : vector<8x128xf32> to vector<1x8x128xf32>
    %c0_19 = arith.constant 0 : index
    %c0_20 = arith.constant 0 : index
    %c0_21 = arith.constant 0 : index
    %18 = vector.load %arg2[%c0_19, %c0_20, %c0_21] : memref<1x8x1xf32, #tpu.memory_space<vmem>>, vector<1x8x1xf32>
    %19 = vector.shape_cast %18 : vector<1x8x1xf32> to vector<8x1xf32>
    %cst = arith.constant 0.000000e+00 : f32
    %20 = vector.broadcast %cst : f32 to vector<8x1xf32>
    %21 = arith.cmpf one, %19, %20 : vector<8x1xf32>
    %22 = vector.shape_cast %21 : vector<8x1xi1> to vector<8x1xi1>
    %23 = vector.broadcast %22 : vector<8x1xi1> to vector<8x128xi1>
    %c0_22 = arith.constant 0 : index
    %c0_23 = arith.constant 0 : index
    %c0_24 = arith.constant 0 : index
    %24 = vector.load %arg1[%c0_22, %c0_23, %c0_24] : memref<1x8x128xf32, #tpu.memory_space<vmem>>, vector<1x8x128xf32>
    %25 = vector.shape_cast %24 : vector<1x8x128xf32> to vector<8x128xf32>
    %cst_25 = arith.constant dense<0.000000e+00> : vector<8xf32>
    %26 = vector.multi_reduction <add>, %25, %cst_25 [1] : vector<8x128xf32> to vector<8xf32>
    %27 = vector.shape_cast %26 : vector<8xf32> to vector<8x1xf32>
    %cst_26 = arith.constant 1.280000e+02 : f32
    %28 = vector.broadcast %cst_26 : f32 to vector<8x1xf32>
    %29 = arith.divf %27, %28 : vector<8x1xf32>
    %30 = vector.broadcast %29 : vector<8x1xf32> to vector<8x128xf32>
    %31 = arith.subf %25, %30 : vector<8x128xf32>
    %32 = arith.mulf %31, %31 : vector<8x128xf32>
    %cst_27 = arith.constant dense<0.000000e+00> : vector<8xf32>
    %33 = vector.multi_reduction <add>, %32, %cst_27 [1] : vector<8x128xf32> to vector<8xf32>
    %34 = vector.shape_cast %33 : vector<8xf32> to vector<8x1xf32>
    %cst_28 = arith.constant 1.280000e+02 : f32
    %35 = vector.broadcast %cst_28 : f32 to vector<8x1xf32>
    %36 = arith.divf %34, %35 : vector<8x1xf32>
    %cst_29 = arith.constant 9.99999974E-6 : f32
    %37 = vector.broadcast %cst_29 : f32 to vector<8x1xf32>
    %38 = arith.addf %36, %37 : vector<8x1xf32>
    %39 = math.rsqrt %38 : vector<8x1xf32>
    %40 = vector.broadcast %39 : vector<8x1xf32> to vector<8x128xf32>
    %41 = arith.mulf %31, %40 : vector<8x128xf32>
    %42 = vector.broadcast %0 : vector<1x128xf32> to vector<8x128xf32>
    %43 = arith.mulf %41, %42 : vector<8x128xf32>
    %44 = vector.broadcast %1 : vector<1x128xf32> to vector<8x128xf32>
    %45 = arith.addf %43, %44 : vector<8x128xf32>
    %cst_30 = arith.constant 0.000000e+00 : f32
    %46 = vector.broadcast %cst_30 : f32 to vector<8x128xf32>
    %47 = arith.select %23, %45, %46 : vector<8x128xi1>, vector<8x128xf32>
    %48 = vector.shape_cast %47 : vector<8x128xf32> to vector<1x8x128xf32>
    "tpu.trace_start"() <{level = 10 : i32, message = "biv,bvd->bid"}> : () -> ()
    %cst_31 = arith.constant dense<0.000000e+00> : vector<1x32x128xf32>
    %49 = tpu.matmul %7, %48, %cst_31 {dimension_numbers = #tpu.dot_dimension_numbers<[2], [1], [1], [2], [0, 0, 0, 1, 1, 2], [0], [0]>} : vector<1x32x8xf32>, vector<1x8x128xf32>, vector<1x32x128xf32> -> vector<1x32x128xf32>
    "tpu.trace_stop"() : () -> ()
    %50 = arith.addf %49, %13 : vector<1x32x128xf32>
    %cst_32 = arith.constant 5.000000e-01 : f32
    %51 = vector.broadcast %cst_32 : f32 to vector<1x32x128xf32>
    %52 = arith.mulf %51, %50 : vector<1x32x128xf32>
    %cst_33 = arith.constant 0.707106769 : f32
    %53 = vector.broadcast %cst_33 : f32 to vector<1x32x128xf32>
    %54 = arith.mulf %50, %53 : vector<1x32x128xf32>
    %55 = math.erf %54 : vector<1x32x128xf32>
    %cst_34 = arith.constant 1.000000e+00 : f32
    %56 = vector.broadcast %cst_34 : f32 to vector<1x32x128xf32>
    %57 = arith.addf %56, %55 : vector<1x32x128xf32>
    %58 = arith.mulf %52, %57 : vector<1x32x128xf32>
    "tpu.trace_start"() <{level = 10 : i32, message = "bvi,bid->bvd"}> : () -> ()
    %cst_35 = arith.constant dense<0.000000e+00> : vector<1x8x128xf32>
    %59 = tpu.matmul %9, %58, %cst_35 {dimension_numbers = #tpu.dot_dimension_numbers<[2], [1], [1], [2], [0, 0, 0, 1, 1, 2], [0], [0]>} : vector<1x8x32xf32>, vector<1x32x128xf32>, vector<1x8x128xf32> -> vector<1x8x128xf32>
    "tpu.trace_stop"() : () -> ()
    %60 = arith.addf %59, %17 : vector<1x8x128xf32>
    %61 = vector.shape_cast %60 : vector<1x8x128xf32> to vector<8x128xf32>
    %62 = arith.addf %25, %61 : vector<8x128xf32>
    %cst_36 = arith.constant dense<0.000000e+00> : vector<8xf32>
    %63 = vector.multi_reduction <add>, %62, %cst_36 [1] : vector<8x128xf32> to vector<8xf32>
    %64 = vector.shape_cast %63 : vector<8xf32> to vector<8x1xf32>
    %cst_37 = arith.constant 1.280000e+02 : f32
    %65 = vector.broadcast %cst_37 : f32 to vector<8x1xf32>
    %66 = arith.divf %64, %65 : vector<8x1xf32>
    %67 = vector.broadcast %66 : vector<8x1xf32> to vector<8x128xf32>
    %68 = arith.subf %62, %67 : vector<8x128xf32>
    %69 = arith.mulf %68, %68 : vector<8x128xf32>
    %cst_38 = arith.constant dense<0.000000e+00> : vector<8xf32>
    %70 = vector.multi_reduction <add>, %69, %cst_38 [1] : vector<8x128xf32> to vector<8xf32>
    %71 = vector.shape_cast %70 : vector<8xf32> to vector<8x1xf32>
    %cst_39 = arith.constant 1.280000e+02 : f32
    %72 = vector.broadcast %cst_39 : f32 to vector<8x1xf32>
    %73 = arith.divf %71, %72 : vector<8x1xf32>
    %cst_40 = arith.constant 9.99999974E-6 : f32
    %74 = vector.broadcast %cst_40 : f32 to vector<8x1xf32>
    %75 = arith.addf %73, %74 : vector<8x1xf32>
    %76 = math.rsqrt %75 : vector<8x1xf32>
    %77 = vector.broadcast %76 : vector<8x1xf32> to vector<8x128xf32>
    %78 = arith.mulf %68, %77 : vector<8x128xf32>
    %79 = vector.broadcast %2 : vector<1x128xf32> to vector<8x128xf32>
    %80 = arith.mulf %78, %79 : vector<8x128xf32>
    %81 = vector.broadcast %3 : vector<1x128xf32> to vector<8x128xf32>
    %82 = arith.addf %80, %81 : vector<8x128xf32>
    %c0_41 = arith.constant 0 : index
    %c0_42 = arith.constant 0 : index
    %83 = vector.load %arg11[%c0_41, %c0_42] : memref<128x256xf32, #tpu.memory_space<vmem>>, vector<128x256xf32>
    %cst_43 = arith.constant dense<0.000000e+00> : vector<8x256xf32>
    %84 = tpu.matmul %82, %83, %cst_43 {dimension_numbers = #tpu.dot_dimension_numbers<[1], [0], [0], [1], [0, 0, 1, 1], [], []>} : vector<8x128xf32>, vector<128x256xf32>, vector<8x256xf32> -> vector<8x256xf32>
    %85 = vector.broadcast %4 : vector<1x256xf32> to vector<8x256xf32>
    %86 = arith.addf %84, %85 : vector<8x256xf32>
    %cst_44 = arith.constant 5.000000e-01 : f32
    %87 = vector.broadcast %cst_44 : f32 to vector<8x256xf32>
    %88 = arith.mulf %87, %86 : vector<8x256xf32>
    %cst_45 = arith.constant 0.707106769 : f32
    %89 = vector.broadcast %cst_45 : f32 to vector<8x256xf32>
    %90 = arith.mulf %86, %89 : vector<8x256xf32>
    %91 = math.erf %90 : vector<8x256xf32>
    %cst_46 = arith.constant 1.000000e+00 : f32
    %92 = vector.broadcast %cst_46 : f32 to vector<8x256xf32>
    %93 = arith.addf %92, %91 : vector<8x256xf32>
    %94 = arith.mulf %88, %93 : vector<8x256xf32>
    %c0_47 = arith.constant 0 : index
    %c0_48 = arith.constant 0 : index
    %95 = vector.load %arg13[%c0_47, %c0_48] : memref<256x128xf32, #tpu.memory_space<vmem>>, vector<256x128xf32>
    %cst_49 = arith.constant dense<0.000000e+00> : vector<8x128xf32>
    %96 = tpu.matmul %94, %95, %cst_49 {dimension_numbers = #tpu.dot_dimension_numbers<[1], [0], [0], [1], [0, 0, 1, 1], [], []>} : vector<8x256xf32>, vector<256x128xf32>, vector<8x128xf32> -> vector<8x128xf32>
    %97 = arith.addf %62, %96 : vector<8x128xf32>
    %98 = vector.broadcast %5 : vector<1x128xf32> to vector<8x128xf32>
    %99 = arith.addf %97, %98 : vector<8x128xf32>
    %cst_50 = arith.constant dense<0.000000e+00> : vector<8xf32>
    %100 = vector.multi_reduction <add>, %99, %cst_50 [1] : vector<8x128xf32> to vector<8xf32>
    %101 = vector.shape_cast %100 : vector<8xf32> to vector<8x1xf32>
    %cst_51 = arith.constant 1.280000e+02 : f32
    %102 = vector.broadcast %cst_51 : f32 to vector<8x1xf32>
    %103 = arith.divf %101, %102 : vector<8x1xf32>
    %104 = vector.broadcast %103 : vector<8x1xf32> to vector<8x128xf32>
    %105 = arith.subf %99, %104 : vector<8x128xf32>
    %106 = arith.mulf %105, %105 : vector<8x128xf32>
    %cst_52 = arith.constant dense<0.000000e+00> : vector<8xf32>
    %107 = vector.multi_reduction <add>, %106, %cst_52 [1] : vector<8x128xf32> to vector<8xf32>
    %108 = vector.shape_cast %107 : vector<8xf32> to vector<8x1xf32>
    %cst_53 = arith.constant 1.280000e+02 : f32
    %109 = vector.broadcast %cst_53 : f32 to vector<8x1xf32>
    %110 = arith.divf %108, %109 : vector<8x1xf32>
    %cst_54 = arith.constant 9.99999974E-6 : f32
    %111 = vector.broadcast %cst_54 : f32 to vector<8x1xf32>
    %112 = arith.addf %110, %111 : vector<8x1xf32>
    %113 = math.rsqrt %112 : vector<8x1xf32>
    %114 = vector.broadcast %113 : vector<8x1xf32> to vector<8x128xf32>
    %115 = arith.mulf %105, %114 : vector<8x128xf32>
    %116 = vector.broadcast %0 : vector<1x128xf32> to vector<8x128xf32>
    %117 = arith.mulf %115, %116 : vector<8x128xf32>
    %118 = vector.broadcast %1 : vector<1x128xf32> to vector<8x128xf32>
    %119 = arith.addf %117, %118 : vector<8x128xf32>
    %cst_55 = arith.constant 0.000000e+00 : f32
    %120 = vector.broadcast %cst_55 : f32 to vector<8x128xf32>
    %121 = arith.select %23, %119, %120 : vector<8x128xi1>, vector<8x128xf32>
    %122 = vector.shape_cast %121 : vector<8x128xf32> to vector<1x8x128xf32>
    "tpu.trace_start"() <{level = 10 : i32, message = "biv,bvd->bid"}> : () -> ()
    %cst_56 = arith.constant dense<0.000000e+00> : vector<1x32x128xf32>
    %123 = tpu.matmul %7, %122, %cst_56 {dimension_numbers = #tpu.dot_dimension_numbers<[2], [1], [1], [2], [0, 0, 0, 1, 1, 2], [0], [0]>} : vector<1x32x8xf32>, vector<1x8x128xf32>, vector<1x32x128xf32> -> vector<1x32x128xf32>
    "tpu.trace_stop"() : () -> ()
    %124 = arith.addf %123, %13 : vector<1x32x128xf32>
    %cst_57 = arith.constant 5.000000e-01 : f32
    %125 = vector.broadcast %cst_57 : f32 to vector<1x32x128xf32>
    %126 = arith.mulf %125, %124 : vector<1x32x128xf32>
    %cst_58 = arith.constant 0.707106769 : f32
    %127 = vector.broadcast %cst_58 : f32 to vector<1x32x128xf32>
    %128 = arith.mulf %124, %127 : vector<1x32x128xf32>
    %129 = math.erf %128 : vector<1x32x128xf32>
    %cst_59 = arith.constant 1.000000e+00 : f32
    %130 = vector.broadcast %cst_59 : f32 to vector<1x32x128xf32>
    %131 = arith.addf %130, %129 : vector<1x32x128xf32>
    %132 = arith.mulf %126, %131 : vector<1x32x128xf32>
    "tpu.trace_start"() <{level = 10 : i32, message = "bvi,bid->bvd"}> : () -> ()
    %cst_60 = arith.constant dense<0.000000e+00> : vector<1x8x128xf32>
    %133 = tpu.matmul %9, %132, %cst_60 {dimension_numbers = #tpu.dot_dimension_numbers<[2], [1], [1], [2], [0, 0, 0, 1, 1, 2], [0], [0]>} : vector<1x8x32xf32>, vector<1x32x128xf32>, vector<1x8x128xf32> -> vector<1x8x128xf32>
    "tpu.trace_stop"() : () -> ()
    %134 = arith.addf %133, %17 : vector<1x8x128xf32>
    %135 = vector.shape_cast %134 : vector<1x8x128xf32> to vector<8x128xf32>
    %136 = arith.addf %99, %135 : vector<8x128xf32>
    %cst_61 = arith.constant dense<0.000000e+00> : vector<8xf32>
    %137 = vector.multi_reduction <add>, %136, %cst_61 [1] : vector<8x128xf32> to vector<8xf32>
    %138 = vector.shape_cast %137 : vector<8xf32> to vector<8x1xf32>
    %cst_62 = arith.constant 1.280000e+02 : f32
    %139 = vector.broadcast %cst_62 : f32 to vector<8x1xf32>
    %140 = arith.divf %138, %139 : vector<8x1xf32>
    %141 = vector.broadcast %140 : vector<8x1xf32> to vector<8x128xf32>
    %142 = arith.subf %136, %141 : vector<8x128xf32>
    %143 = arith.mulf %142, %142 : vector<8x128xf32>
    %cst_63 = arith.constant dense<0.000000e+00> : vector<8xf32>
    %144 = vector.multi_reduction <add>, %143, %cst_63 [1] : vector<8x128xf32> to vector<8xf32>
    %145 = vector.shape_cast %144 : vector<8xf32> to vector<8x1xf32>
    %cst_64 = arith.constant 1.280000e+02 : f32
    %146 = vector.broadcast %cst_64 : f32 to vector<8x1xf32>
    %147 = arith.divf %145, %146 : vector<8x1xf32>
    %cst_65 = arith.constant 9.99999974E-6 : f32
    %148 = vector.broadcast %cst_65 : f32 to vector<8x1xf32>
    %149 = arith.addf %147, %148 : vector<8x1xf32>
    %150 = math.rsqrt %149 : vector<8x1xf32>
    %151 = vector.broadcast %150 : vector<8x1xf32> to vector<8x128xf32>
    %152 = arith.mulf %142, %151 : vector<8x128xf32>
    %153 = vector.broadcast %2 : vector<1x128xf32> to vector<8x128xf32>
    %154 = arith.mulf %152, %153 : vector<8x128xf32>
    %155 = vector.broadcast %3 : vector<1x128xf32> to vector<8x128xf32>
    %156 = arith.addf %154, %155 : vector<8x128xf32>
    %c0_66 = arith.constant 0 : index
    %c0_67 = arith.constant 0 : index
    %157 = vector.load %arg11[%c0_66, %c0_67] : memref<128x256xf32, #tpu.memory_space<vmem>>, vector<128x256xf32>
    %cst_68 = arith.constant dense<0.000000e+00> : vector<8x256xf32>
    %158 = tpu.matmul %156, %157, %cst_68 {dimension_numbers = #tpu.dot_dimension_numbers<[1], [0], [0], [1], [0, 0, 1, 1], [], []>} : vector<8x128xf32>, vector<128x256xf32>, vector<8x256xf32> -> vector<8x256xf32>
    %159 = vector.broadcast %4 : vector<1x256xf32> to vector<8x256xf32>
    %160 = arith.addf %158, %159 : vector<8x256xf32>
    %cst_69 = arith.constant 5.000000e-01 : f32
    %161 = vector.broadcast %cst_69 : f32 to vector<8x256xf32>
    %162 = arith.mulf %161, %160 : vector<8x256xf32>
    %cst_70 = arith.constant 0.707106769 : f32
    %163 = vector.broadcast %cst_70 : f32 to vector<8x256xf32>
    %164 = arith.mulf %160, %163 : vector<8x256xf32>
    %165 = math.erf %164 : vector<8x256xf32>
    %cst_71 = arith.constant 1.000000e+00 : f32
    %166 = vector.broadcast %cst_71 : f32 to vector<8x256xf32>
    %167 = arith.addf %166, %165 : vector<8x256xf32>
    %168 = arith.mulf %162, %167 : vector<8x256xf32>
    %c0_72 = arith.constant 0 : index
    %c0_73 = arith.constant 0 : index
    %169 = vector.load %arg13[%c0_72, %c0_73] : memref<256x128xf32, #tpu.memory_space<vmem>>, vector<256x128xf32>
    %cst_74 = arith.constant dense<0.000000e+00> : vector<8x128xf32>
    %170 = tpu.matmul %168, %169, %cst_74 {dimension_numbers = #tpu.dot_dimension_numbers<[1], [0], [0], [1], [0, 0, 1, 1], [], []>} : vector<8x256xf32>, vector<256x128xf32>, vector<8x128xf32> -> vector<8x128xf32>
    %171 = arith.addf %136, %170 : vector<8x128xf32>
    %172 = vector.broadcast %5 : vector<1x128xf32> to vector<8x128xf32>
    %173 = arith.addf %171, %172 : vector<8x128xf32>
    %cst_75 = arith.constant dense<0.000000e+00> : vector<8xf32>
    %174 = vector.multi_reduction <add>, %173, %cst_75 [1] : vector<8x128xf32> to vector<8xf32>
    %175 = vector.shape_cast %174 : vector<8xf32> to vector<8x1xf32>
    %cst_76 = arith.constant 1.280000e+02 : f32
    %176 = vector.broadcast %cst_76 : f32 to vector<8x1xf32>
    %177 = arith.divf %175, %176 : vector<8x1xf32>
    %178 = vector.broadcast %177 : vector<8x1xf32> to vector<8x128xf32>
    %179 = arith.subf %173, %178 : vector<8x128xf32>
    %180 = arith.mulf %179, %179 : vector<8x128xf32>
    %cst_77 = arith.constant dense<0.000000e+00> : vector<8xf32>
    %181 = vector.multi_reduction <add>, %180, %cst_77 [1] : vector<8x128xf32> to vector<8xf32>
    %182 = vector.shape_cast %181 : vector<8xf32> to vector<8x1xf32>
    %cst_78 = arith.constant 1.280000e+02 : f32
    %183 = vector.broadcast %cst_78 : f32 to vector<8x1xf32>
    %184 = arith.divf %182, %183 : vector<8x1xf32>
    %cst_79 = arith.constant 9.99999974E-6 : f32
    %185 = vector.broadcast %cst_79 : f32 to vector<8x1xf32>
    %186 = arith.addf %184, %185 : vector<8x1xf32>
    %187 = math.rsqrt %186 : vector<8x1xf32>
    %188 = vector.broadcast %187 : vector<8x1xf32> to vector<8x128xf32>
    %189 = arith.mulf %179, %188 : vector<8x128xf32>
    %190 = vector.broadcast %0 : vector<1x128xf32> to vector<8x128xf32>
    %191 = arith.mulf %189, %190 : vector<8x128xf32>
    %192 = vector.broadcast %1 : vector<1x128xf32> to vector<8x128xf32>
    %193 = arith.addf %191, %192 : vector<8x128xf32>
    %cst_80 = arith.constant 0.000000e+00 : f32
    %194 = vector.broadcast %cst_80 : f32 to vector<8x128xf32>
    %195 = arith.select %23, %193, %194 : vector<8x128xi1>, vector<8x128xf32>
    %196 = vector.shape_cast %195 : vector<8x128xf32> to vector<1x8x128xf32>
    "tpu.trace_start"() <{level = 10 : i32, message = "biv,bvd->bid"}> : () -> ()
    %cst_81 = arith.constant dense<0.000000e+00> : vector<1x32x128xf32>
    %197 = tpu.matmul %7, %196, %cst_81 {dimension_numbers = #tpu.dot_dimension_numbers<[2], [1], [1], [2], [0, 0, 0, 1, 1, 2], [0], [0]>} : vector<1x32x8xf32>, vector<1x8x128xf32>, vector<1x32x128xf32> -> vector<1x32x128xf32>
    "tpu.trace_stop"() : () -> ()
    %198 = arith.addf %197, %13 : vector<1x32x128xf32>
    %cst_82 = arith.constant 5.000000e-01 : f32
    %199 = vector.broadcast %cst_82 : f32 to vector<1x32x128xf32>
    %200 = arith.mulf %199, %198 : vector<1x32x128xf32>
    %cst_83 = arith.constant 0.707106769 : f32
    %201 = vector.broadcast %cst_83 : f32 to vector<1x32x128xf32>
    %202 = arith.mulf %198, %201 : vector<1x32x128xf32>
    %203 = math.erf %202 : vector<1x32x128xf32>
    %cst_84 = arith.constant 1.000000e+00 : f32
    %204 = vector.broadcast %cst_84 : f32 to vector<1x32x128xf32>
    %205 = arith.addf %204, %203 : vector<1x32x128xf32>
    %206 = arith.mulf %200, %205 : vector<1x32x128xf32>
    "tpu.trace_start"() <{level = 10 : i32, message = "bvi,bid->bvd"}> : () -> ()
    %cst_85 = arith.constant dense<0.000000e+00> : vector<1x8x128xf32>
    %207 = tpu.matmul %9, %206, %cst_85 {dimension_numbers = #tpu.dot_dimension_numbers<[2], [1], [1], [2], [0, 0, 0, 1, 1, 2], [0], [0]>} : vector<1x8x32xf32>, vector<1x32x128xf32>, vector<1x8x128xf32> -> vector<1x8x128xf32>
    "tpu.trace_stop"() : () -> ()
    %208 = arith.addf %207, %17 : vector<1x8x128xf32>
    %209 = vector.shape_cast %208 : vector<1x8x128xf32> to vector<8x128xf32>
    %210 = arith.addf %173, %209 : vector<8x128xf32>
    %cst_86 = arith.constant dense<0.000000e+00> : vector<8xf32>
    %211 = vector.multi_reduction <add>, %210, %cst_86 [1] : vector<8x128xf32> to vector<8xf32>
    %212 = vector.shape_cast %211 : vector<8xf32> to vector<8x1xf32>
    %cst_87 = arith.constant 1.280000e+02 : f32
    %213 = vector.broadcast %cst_87 : f32 to vector<8x1xf32>
    %214 = arith.divf %212, %213 : vector<8x1xf32>
    %215 = vector.broadcast %214 : vector<8x1xf32> to vector<8x128xf32>
    %216 = arith.subf %210, %215 : vector<8x128xf32>
    %217 = arith.mulf %216, %216 : vector<8x128xf32>
    %cst_88 = arith.constant dense<0.000000e+00> : vector<8xf32>
    %218 = vector.multi_reduction <add>, %217, %cst_88 [1] : vector<8x128xf32> to vector<8xf32>
    %219 = vector.shape_cast %218 : vector<8xf32> to vector<8x1xf32>
    %cst_89 = arith.constant 1.280000e+02 : f32
    %220 = vector.broadcast %cst_89 : f32 to vector<8x1xf32>
    %221 = arith.divf %219, %220 : vector<8x1xf32>
    %cst_90 = arith.constant 9.99999974E-6 : f32
    %222 = vector.broadcast %cst_90 : f32 to vector<8x1xf32>
    %223 = arith.addf %221, %222 : vector<8x1xf32>
    %224 = math.rsqrt %223 : vector<8x1xf32>
    %225 = vector.broadcast %224 : vector<8x1xf32> to vector<8x128xf32>
    %226 = arith.mulf %216, %225 : vector<8x128xf32>
    %227 = vector.broadcast %2 : vector<1x128xf32> to vector<8x128xf32>
    %228 = arith.mulf %226, %227 : vector<8x128xf32>
    %229 = vector.broadcast %3 : vector<1x128xf32> to vector<8x128xf32>
    %230 = arith.addf %228, %229 : vector<8x128xf32>
    %c0_91 = arith.constant 0 : index
    %c0_92 = arith.constant 0 : index
    %231 = vector.load %arg11[%c0_91, %c0_92] : memref<128x256xf32, #tpu.memory_space<vmem>>, vector<128x256xf32>
    %cst_93 = arith.constant dense<0.000000e+00> : vector<8x256xf32>
    %232 = tpu.matmul %230, %231, %cst_93 {dimension_numbers = #tpu.dot_dimension_numbers<[1], [0], [0], [1], [0, 0, 1, 1], [], []>} : vector<8x128xf32>, vector<128x256xf32>, vector<8x256xf32> -> vector<8x256xf32>
    %233 = vector.broadcast %4 : vector<1x256xf32> to vector<8x256xf32>
    %234 = arith.addf %232, %233 : vector<8x256xf32>
    %cst_94 = arith.constant 5.000000e-01 : f32
    %235 = vector.broadcast %cst_94 : f32 to vector<8x256xf32>
    %236 = arith.mulf %235, %234 : vector<8x256xf32>
    %cst_95 = arith.constant 0.707106769 : f32
    %237 = vector.broadcast %cst_95 : f32 to vector<8x256xf32>
    %238 = arith.mulf %234, %237 : vector<8x256xf32>
    %239 = math.erf %238 : vector<8x256xf32>
    %cst_96 = arith.constant 1.000000e+00 : f32
    %240 = vector.broadcast %cst_96 : f32 to vector<8x256xf32>
    %241 = arith.addf %240, %239 : vector<8x256xf32>
    %242 = arith.mulf %236, %241 : vector<8x256xf32>
    %c0_97 = arith.constant 0 : index
    %c0_98 = arith.constant 0 : index
    %243 = vector.load %arg13[%c0_97, %c0_98] : memref<256x128xf32, #tpu.memory_space<vmem>>, vector<256x128xf32>
    %cst_99 = arith.constant dense<0.000000e+00> : vector<8x128xf32>
    %244 = tpu.matmul %242, %243, %cst_99 {dimension_numbers = #tpu.dot_dimension_numbers<[1], [0], [0], [1], [0, 0, 1, 1], [], []>} : vector<8x256xf32>, vector<256x128xf32>, vector<8x128xf32> -> vector<8x128xf32>
    %245 = arith.addf %210, %244 : vector<8x128xf32>
    %246 = vector.broadcast %5 : vector<1x128xf32> to vector<8x128xf32>
    %247 = arith.addf %245, %246 : vector<8x128xf32>
    %248 = vector.shape_cast %247 : vector<8x128xf32> to vector<1x8x128xf32>
    %c0_100 = arith.constant 0 : index
    %c0_101 = arith.constant 0 : index
    %c0_102 = arith.constant 0 : index
    %249 = vector.load %arg15[%c0_100, %c0_101, %c0_102] : memref<1x8x128xf32, #tpu.memory_space<vmem>>, vector<1x8x128xf32>
    tpu.vector_store %arg15[%c0_100, %c0_101, %c0_102], %248 {strides = array<i32>} : memref<1x8x128xf32, #tpu.memory_space<vmem>>, vector<1x8x128xf32>,
    return
  }
  func.func @transform_0(%arg0: i32) -> (i32, i32, i32) {
    %c0_i32 = arith.constant 0 : i32
    %c0_i32_0 = arith.constant 0 : i32
    %c0_i32_1 = arith.constant 0 : i32
    return %arg0, %c0_i32, %c0_i32_0 : i32, i32, i32
  }
  func.func @transform_1(%arg0: i32) -> (i32, i32, i32) {
    %c0_i32 = arith.constant 0 : i32
    %c0_i32_0 = arith.constant 0 : i32
    %c0_i32_1 = arith.constant 0 : i32
    return %arg0, %c0_i32, %c0_i32_0 : i32, i32, i32
  }
  func.func @transform_2(%arg0: i32) -> (i32, i32) {
    %c0_i32 = arith.constant 0 : i32
    %c0_i32_0 = arith.constant 0 : i32
    %c0_i32_1 = arith.constant 0 : i32
    return %c0_i32, %c0_i32_0 : i32, i32
  }
  func.func @transform_3(%arg0: i32) -> (i32, i32) {
    %c0_i32 = arith.constant 0 : i32
    %c0_i32_0 = arith.constant 0 : i32
    %c0_i32_1 = arith.constant 0 : i32
    return %c0_i32, %c0_i32_0 : i32, i32
  }
  func.func @transform_4(%arg0: i32) -> (i32, i32) {
    %c0_i32 = arith.constant 0 : i32
    %c0_i32_0 = arith.constant 0 : i32
    %c0_i32_1 = arith.constant 0 : i32
    return %c0_i32, %c0_i32_0 : i32, i32
  }
  func.func @transform_5(%arg0: i32) -> (i32, i32) {
    %c0_i32 = arith.constant 0 : i32
    %c0_i32_0 = arith.constant 0 : i32
    %c0_i32_1 = arith.constant 0 : i32
    return %c0_i32, %c0_i32_0 : i32, i32
  }
  func.func @transform_6(%arg0: i32) -> (i32, i32) {
    %c0_i32 = arith.constant 0 : i32
    %c0_i32_0 = arith.constant 0 : i32
    %c0_i32_1 = arith.constant 0 : i32
    return %c0_i32, %c0_i32_0 : i32, i32
  }
  func.func @transform_7(%arg0: i32) -> (i32, i32) {
    %c0_i32 = arith.constant 0 : i32
    %c0_i32_0 = arith.constant 0 : i32
    %c0_i32_1 = arith.constant 0 : i32
    return %c0_i32, %c0_i32_0 : i32, i32
  }
  func.func @transform_8(%arg0: i32) -> (i32, i32) {
    %c0_i32 = arith.constant 0 : i32
    %c0_i32_0 = arith.constant 0 : i32
    %c0_i32_1 = arith.constant 0 : i32
    return %c0_i32, %c0_i32_0 : i32, i32
  }
  func.func @transform_9(%arg0: i32) -> (i32, i32) {
    %c0_i32 = arith.constant 0 : i32
    %c0_i32_0 = arith.constant 0 : i32
    %c0_i32_1 = arith.constant 0 : i32
    return %c0_i32, %c0_i32_0 : i32, i32
  }
  func.func @transform_10(%arg0: i32) -> (i32, i32) {
    %c0_i32 = arith.constant 0 : i32
    %c0_i32_0 = arith.constant 0 : i32
    %c0_i32_1 = arith.constant 0 : i32
    return %c0_i32, %c0_i32_0 : i32, i32
  }
  func.func @transform_11(%arg0: i32) -> (i32, i32) {
    %c0_i32 = arith.constant 0 : i32
    %c0_i32_0 = arith.constant 0 : i32
    %c0_i32_1 = arith.constant 0 : i32
    return %c0_i32, %c0_i32_0 : i32, i32
  }
  func.func @transform_12(%arg0: i32) -> (i32, i32) {
    %c0_i32 = arith.constant 0 : i32
    %c0_i32_0 = arith.constant 0 : i32
    %c0_i32_1 = arith.constant 0 : i32
    return %c0_i32, %c0_i32_0 : i32, i32
  }
  func.func @transform_13(%arg0: i32) -> (i32, i32) {
    %c0_i32 = arith.constant 0 : i32
    %c0_i32_0 = arith.constant 0 : i32
    %c0_i32_1 = arith.constant 0 : i32
    return %c0_i32, %c0_i32_0 : i32, i32
  }
  func.func @transform_14(%arg0: i32) -> (i32, i32, i32) {
    %c0_i32 = arith.constant 0 : i32
    %c0_i32_0 = arith.constant 0 : i32
    %c0_i32_1 = arith.constant 0 : i32
    return %arg0, %c0_i32, %c0_i32_0 : i32, i32, i32
  }
}

</mosaic_0001>

<bundles_post_ra>
// kernel: mlp_mixer_forward.1
= control target key start
LH: loop header
LB: loop body
LE: loop exit
PB: predicated region body
PF: predicated region fallthrough
CT: control target
= control target key end

     0   :  { %s3308_s0 = inlined_call_operand.hbm [shape: f32[2,8,128], index: 0, kind: input, shape index: {}, may-alias: {0,14}]   ;;  %s3309_s1 = inlined_call_operand.vmem [shape: f32[2,8,1], index: 1, kind: input, shape index: {}]   ;;  %s3310_s2 = inlined_call_operand.vmem [shape: f32[1,128], index: 2, kind: input, shape index: {}]   ;;  %s3311_s3 = inlined_call_operand.vmem [shape: f32[1,128], index: 3, kind: input, shape index: {}]   ;;  %s3312_s4 = inlined_call_operand.vmem [shape: f32[32,8], index: 4, kind: input, shape index: {}]   ;;  %s3313_s5 = inlined_call_operand.vmem [shape: f32[32,1], index: 5, kind: input, shape index: {}]   ;;  %s3314_s6 = inlined_call_operand.vmem [shape: f32[8,32], index: 6, kind: input, shape index: {}]   ;;  %s3315_s7 = inlined_call_operand.vmem [shape: f32[8,1], index: 7, kind: input, shape index: {}]   ;;  %s3316_s8 = inlined_call_operand.vmem [shape: f32[1,128], index: 8, kind: input, shape index: {}]   ;;  %s3317_s9 = inlined_call_operand.vmem [shape: f32[1,128], index: 9, kind: input, shape index: {}]   ;;  %s3318_s10 = inlined_call_operand.hbm [shape: f32[128,256], index: 10, kind: input, shape index: {}]   ;;  %s3319_s11 = inlined_call_operand.vmem [shape: f32[1,256], index: 11, kind: input, shape index: {}]   ;;  %s3320_s12 = inlined_call_operand.hbm [shape: f32[256,128], index: 12, kind: input, shape index: {}]   ;;  %s3321_s13 = inlined_call_operand.vmem [shape: f32[1,128], index: 13, kind: input, shape index: {}]   ;;  %s3322_s14 = inlined_call_operand.hbm [shape: f32[2,8,128], index: 14, kind: output, shape index: {}, may-alias: {0,14}]  }
   0x1   :  { %3411 = sst [smem:[#allocation61_spill]] %s3318_s10 }
   0x2   :  { %3412 = sst [smem:[#allocation62_spill]] %s3320_s12 }
   0x3   :  { %3413 = sst [smem:[#allocation63_spill]] %s3322_s14 }
   0x4   :  { %19 = vsyncpa [#allocation3], 0 }
   0x5   :  { %21 = vsyncpa [#allocation3 + $0x1], 0 }
   0x6   :  { %22 = vsyncpa [#allocation6], 0 }
   0x7   :  { %23 = vsyncpa [#allocation4], 0 }
   0x8   :  { %25 = vsyncpa [#allocation4 + $0x1], 0  ;;  %s2605_s29 = smov 0   ;;  %s2607_s30 = smov 0  }
   0x9   :  { %s2609_s15 = smov 0   ;;  %s2611_s16 = smov 0  }
   0xa LB: > { %3414 = sst [smem:[#allocation12_spill]] %s2505_s29  ;;  %s2626_s17 = sadd.s32 4294967295, %s2517_s16   ;;  %s2517_s16 = sphi %s2611_s16, %s3553_s16   ;;  %s2513_s15 = sphi %s2609_s15, %s3555_s15   ;;  %s2509_s30 = sphi %s2607_s30, %s3557_s30   ;;  %s2505_s29 = sphi %s2605_s29, %s3556_s29  }
   0xb   : > { %3415 = sst [smem:[#allocation13_spill]] %s2513_s15  ;;  %s2013_s18 = sadd.s32 4294967294, %s2517_s16  }
   0xc   : > { %3416 = sst [smem:[#allocation14_spill]] %s2517_s16  ;;  %p51_p0 = scmp.ne.s32.totalorder %s2509_s30, %s2505_s29 }
   0xd   : > { %p3324_p1 = scmp.eq.s32.totalorder %s2626_s17, 0  ;;  %p359_p3 = scmp.eq.s32.totalorder %s2013_s18, 1 }
   0xe   : > { %p2014_p5 = scmp.ge.s32.totalorder %s2517_s16, 1  ;;  %p366_p7 = scmp.lt.s32.totalorder %s2517_s16, 3 }
   0xf   : > { %p2635_p4 = por %p3324_p1, %p51_p0  ;;  %p2640_p6 = por %p359_p3, %p51_p0 }
  0x10   : > { %p2645_p8 = pnand %p2014_p5, %p366_p7  ;;  %s2519_s22 = smov [#allocation5]  }
  0x11   : > { %s3417_s19 = scalar_select %p2635_p4, 1, 0 }
  0x12   : > { %s3418_s20 = scalar_select %p2640_p6, 1, 0 }
  0x13   : > { %s3420_s21 = scalar_select %p2645_p8, 1, 0 }
  0x14   : > { %3419 = sst [smem:[#allocation15_spill]] %s3418_s20  ;;  %s402_s23 = sshll.u32 %s2519_s22, 4  ;;  %s403_s23 = int_to_ptr.vmem [resolvable:$true] %s402_s23 }
  0x15   : > { %p2257_p9 = pneg %p2645_p8  ;;  %s2520_s25 = smov [#allocation7]  }
  0x16   : > { %s418_s26 = sshll.u32 %s2520_s25, 4  ;;  %s2380_s27 = scalar_lea.vmem %s403_s23, 4096  ;;  %s419_s26 = int_to_ptr.vmem [resolvable:$true] %s418_s26 }
  0x17   : > { %p2654_p11 = pnand %p2257_p9, %p3324_p1  ;;  %p2381_p13 = scmp.ne.s32.totalorder %s403_s23, %s2380_s27 }
  0x18   : > { %p2388_p5 = scmp.lt.s32.totalorder %s403_s23, %s403_s23  ;;  %p2389_p7 = scmp.lt.s32.totalorder %s2380_s27, %s2380_s27 }
  0x19   : > { %p2371_p12 = pneg %p2654_p11 }
  0x1a   : > { %p2390_p10 = por %p2389_p7, %p2388_p5 }
  0x1b   : > { %p2383_p0 = pnand %p2381_p13, %p2371_p12 }
  0x1d   : > { %p2384_p3 = pneg %p2383_p0 }
  0x1f   : > { %p2391_p9 = pnand %p2390_p10, %p2384_p3 }
  0x21   : > { %2394 = shalt.err (!%p2391_p9)
}
  0x22   : > { %s2521_s28 = smov 256   ;;  %s2522_s18 = smov 16  }
  0x23   : > { %s3422_s10 = sld [smem:[#allocation61_spill]]  ;;  %s2406_s20 = scalar_lea.vmem %s419_s26, 4096 }
  0x24   : > { %p2407_p1 = scmp.ne.s32.totalorder %s419_s26, %s2406_s20  ;;  %p2414_p2 = scmp.lt.s32.totalorder %s419_s26, %s419_s26 }
  0x25   : > { %p2415_p6 = scmp.lt.s32.totalorder %s2406_s20, %s2406_s20 }
  0x26   : > { %p2409_p13 = pnand %p2407_p1, %p2371_p12 }
  0x27   : > { %p2416_p5 = por %p2415_p6, %p2414_p2 }
  0x28   : > { %p2410_p0 = pneg %p2409_p13 }
  0x29   : > { %2260 = dma.hbm_to_vmem [thread:$0]  (!%p2654_p11), %s3422_s10, 4096, %s403_s23, [#allocation6], %s2521_s28, %s2521_s28, %s2522_s18  }
  0x2a   : > { %p2417_p10 = pnand %p2416_p5, %p2410_p0 }
  0x2c   : > { %2420 = shalt.err (!%p2417_p10)
}
  0x2d   : > { %s2523_s27 = smov 128   ;;  %s2524_s23 = smov 8  }
  0x2e   : > { %s3423_s12 = sld [smem:[#allocation62_spill]]  ;;  %s2677_s18 = sadd.s32 1, %s2517_s16  }
  0x2f   : > { %3424 = sst [smem:[#allocation16_spill]] %s2677_s18  ;;  %s35_s22 = ssub.s32 %s2517_s16, %s2677_s18 }
  0x30   : > { %p36_p1 = scmp.eq.s32.totalorder %s35_s22, 0  ;;  %s38_s25 = sadd.s32 1, %s2513_s15 }
  0x31   : > { %p45_p2 = scmp.ne.s32.totalorder %s2513_s15, %s2509_s30  ;;  %p46_p6 = scmp.eq.s32.totalorder %s2517_s16, 0 }
  0x32   : > { %s2686_s10 = scalar_select %p36_p1, %s2513_s15, %s38_s25  }
  0x33   : > { %p47_p12 = por %p46_p6, %p45_p2  ;;  %p3426_p3 = scmp.eq.s32.totalorder %s2626_s17, 1 }
  0x34   : > { %2263 = dma.hbm_to_vmem [thread:$0]  (!%p2654_p11), %s3423_s12, 4096, %s419_s26, [#allocation6], %s2523_s27, %s2523_s27, %s2524_s23  }
  0x35   : > { %3425 = sst [smem:[#allocation17_spill]] %s2686_s10  ;;  %p2690_p7 = por %p3426_p3, %p45_p2 }
  0x36   : > { %p2274_p9 = scmp.lt.s32.totalorder %s2517_s16, 2  ;;  %s435_s24 = sand.u32 1, %s2513_s15  }
  0x37   : > { %s3427_s29 = scalar_select %p2690_p7, 1, 0 }
  0x38   : > { %s2018_s28 = sshll.u32 %s435_s24, 3  ;;  %s2019_s26 = sshll.u32 %s2517_s16, 7 }
  0x39   : > { %s2700_s20 = scalar_lea.hbm %s3308_s0, %s2019_s26  ;;  %s439_s22 = scalar_lea.vmem [#allocation2], %s2018_s28 }
  0x3a   : > { %s446_s25 = sshll.u32 %s439_s22, 4  ;;  %p2702_p11 = pnand %p2274_p9, %p47_p12  ;;  %s447_s25 = int_to_ptr.vmem [resolvable:$true] %s446_s25 }
  0x3b   : > { %s436_s10 = scalar_lea.sflag [#allocation3], %s435_s24  ;;  %s2421_s15 = scalar_lea.hbm %s2700_s20, 128 }
  0x3c   : > { %p2422_p13 = scmp.ne.s32.totalorder %s2700_s20, %s2421_s15  ;;  %p2423_p0 = pneg %p2702_p11 }
  0x3d   : > { %s2426_s23 = scalar_lea.hbm %s3308_s0, 256  ;;  %p2427_p1 = scmp.lt.s32.totalorder %s2700_s20, %s3308_s0 }
  0x3e   : > { %p2424_p5 = pnand %p2423_p0, %p2422_p13  ;;  %p2428_p2 = scmp.lt.s32.totalorder %s2426_s23, %s2421_s15 }
  0x40   : > { %p2425_p10 = pneg %p2424_p5  ;;  %p2429_p6 = por %p2428_p2, %p2427_p1 }
  0x42   : > { %p2430_p12 = pnand %p2429_p6, %p2425_p10 }
  0x44   : > { %2433 = shalt.err (!%p2430_p12)
}
  0x45   : > { %s2434_s22 = scalar_lea.vmem %s447_s25, 128  ;;  %s2525_s24 = smov [#allocation2]  }
  0x46   : > { %p2435_p3 = scmp.ne.s32.totalorder %s447_s25, %s2434_s22  ;;  %s2439_s16 = sshll.u32 %s2525_s24, 4  ;;  %s2440_s16 = int_to_ptr.vmem [resolvable:$false] %s2439_s16 }
  0x47   : > { %s2441_s14 = scalar_lea.vmem %s2440_s16, 256  ;;  %p2442_p13 = scmp.lt.s32.totalorder %s447_s25, %s2440_s16 }
  0x48   : > { %p2437_p9 = pnand %p2435_p3, %p2423_p0  ;;  %p2443_p5 = scmp.lt.s32.totalorder %s2441_s14, %s2434_s22 }
  0x4a   : > { %p2438_p7 = pneg %p2437_p9  ;;  %p2444_p4 = por %p2443_p5, %p2442_p13 }
  0x4c   : > { %p2445_p8 = pnand %p2444_p4, %p2438_p7 }
  0x4e   : > { %2448 = shalt.err (!%p2445_p8)
}
  0x4f   : > { %2267 = dma.hbm_to_vmem [thread:$0]  (!%p2702_p11), %s2700_s20, 128, %s447_s25, %s436_s10  }
  0x50   : > { %p3429_p10 = scmp.ne.s32.totalorder %s3420_s21, 0 }
  0x52   : > { %462 = sbr.rel (%p3429_p10) target bundleno = 4476 (0x117c), region = 76 }
  0x57   : > { %s2723_s15 = sand.u32 1, %s2509_s30   ;;  %p3430_p4 = scmp.ne.s32.totalorder %s3417_s19, 0 }
  0x58   : > { %s2021_s18 = sshll.u32 %s2723_s15, 3  ;;  %s465_s16 = scalar_lea.sflag [#allocation3], %s2723_s15 }
  0x59   : > { %s468_s14 = scalar_lea.vmem [#allocation2], %s2021_s18 }
  0x5a   : > { %2492 = dma.done.wait (%p3430_p4), %s465_s16, 128  }
  0x5b   : > { %2494 = vsyncadd (%p3430_p4), %s465_s16, 4294967168  ;;  %p3431_p8 = scmp.eq.s32.totalorder %s2626_s17, 0 }
  0x5d   : > { %2496 = dma.done.wait (%p3431_p8), [#allocation6], 8192   ;;  %p3432_p7 = pmov %p3431_p8 }
  0x5e   : > { %v2737_v0 = vld [vmem:[%s468_s14] sm:$0xff]  ;;  %p525_p11 = scmp.lt.s32.totalorder %s2626_s17, 1  ;;  %v2526_v1 = vmov 0   ;;  %v543_v4 = vld [vmem:[%s3313_s5 + $0x18] sm:$0xff]  ;;  %vm605_vm1 = vcmask 64512   ;;  %v542_v13 = vld [vmem:[%s3313_s5 + $0x10] sm:$0xff] }
  0x5f   : > { %2498 = vsyncadd (%p3432_p7), [#allocation6], 4294959104  ;;  %578 = vadd.xlane.f32.xlu0 %v2737_v0  ;;  %2319 = vset.pattern.permute.xlu1 %v2526_v1  ;;  %v541_v5 = vld [vmem:[%s3313_s5 + $0x8] sm:$0xff]  ;;  %v540_v6 = vld [vmem:[%s3313_s5] sm:$0xff]  ;;  %v3334_v27 = vmov 0.0   ;;  %vm2528_vm3 = vmmov 0  }
  0x60   : > { %2320 = vset.pattern.permute.xlu0 %v2526_v1  ;;  %s526_s10 = scalar_select %p525_p11, %s2626_s17, 1  ;;  %v564_v7 = vld [vmem:[%s3315_s7] sm:$0xff]  ;;  %v2786_v24 = vld [vmem:[%s3312_s4 + $0x8] sm:$0xff]  ;;  %v2793_v25 = vld [vmem:[%s3312_s4 + $0x10] sm:$0xff]  ;;  %2196 = vmatprep.subr.mxu1 %v3334_v27  ;;  %vm723_vm4 = vcmask 261120  }
  0x61   : > { %v2761_v12 = vld [vmem:[%s3312_s4] sm:$0xff]  ;;  %v2804_v26 = vld [vmem:[%s3312_s4 + $0x18] sm:$0xff]  ;;  %2204 = vmatprep.mubr.msk.f32.mxu1 %vm2528_vm3, %v3334_v27  ;;  %s2050_s28 = sshll.u32 %s2626_s17, 7  ;;  %s524_s22 = scalar_lea.vmem [#allocation8], %s2021_s18 }
  0x62   : > { %s2025_s12 = sshll.u32 %s526_s10, 3  ;;  %3433 = vst [vmem:[#allocation18_spill] sm:$0xff] %v2761_v12  ;;  %2190 = vmatprep.mubr.msk.f32.mxu0 %vm605_vm1, %v2761_v12  ;;  %v2771_v18 = vld [vmem:[%s3310_s2] ss:$0 sm:$0xff]  ;;  %s1912_s24 = sshll.u32 %s524_s22, 4  ;;  %s1913_s24 = int_to_ptr.vmem [resolvable:$true] %s1912_s24 }
  0x63   : > { %s528_s20 = scalar_lea.vmem %s3309_s1, %s2025_s12  ;;  %v2776_v20 = vld [vmem:[%s3311_s3] ss:$0 sm:$0xff]  ;;  %s3546_s10 = sld [smem:[#allocation63_spill]] }
  0x64   : > { %v570_v2 = vld [vmem:[%s528_s20] sm:$0xff]  ;;  %s1899_s19 = scalar_lea.sflag [#allocation4], %s2723_s15  ;;  %s2449_s21 = scalar_lea.vmem %s1913_s24, 128 }
  0x65   : > { %vm571_vm0 = vcmp.ne.f32.partialorder %v570_v2, 0.0  ;;  %v2829_v60 = vld [vmem:[%s3314_s6] sm:$0xff]  ;;  %p2450_p0 = scmp.ne.s32.totalorder %s1913_s24, %s2449_s21  ;;  %p3547_p1 = scmp.ne.s32.totalorder %s3427_s29, 0 }
  0x66   : > { %v572_v3 = vsel %vm571_vm0, 1, %v2526_v1  ;;  %s2529_s20 = smov [#allocation8]  }
  0x67   : > { %574 = vperm.xlu1 %2319, %v572_v3   ;;  %v2841_v3 = vld [vmem:[#allocation5 + $0xf8] sm:$0xff]  ;;  %p2451_p2 = pnand %p2450_p0, %p3547_p1  ;;  %s2453_s17 = sshll.u32 %s2529_s20, 4  ;;  %s2454_s17 = int_to_ptr.vmem [resolvable:$false] %s2453_s17 }
  0x68   : > { %3438 = vst [vmem:[#allocation23_spill] sm:$0xff] %v2841_v3  ;;  %s2455_s18 = scalar_lea.vmem %s2454_s17, 256  ;;  %p2456_p12 = scmp.lt.s32.totalorder %s1913_s24, %s2454_s17 }
  0x69   : > { %s1910_s12 = scalar_lea.hbm %s3546_s10, %s2050_s28  ;;  %p2452_p6 = pneg %p2451_p2 }
  0x6a   : > { %p2457_p3 = scmp.lt.s32.totalorder %s2455_s18, %s2449_s21 }
  0x6b   : > { %561 = vperm.xlu1 %2319, %v543_v4   ;;  %v2843_v4 = vld [vmem:[#allocation5 + $0xf0] sm:$0xff] }
  0x6c   : > { %p2458_p9 = por %p2457_p3, %p2456_p12 }
  0x6e   : > { %p2459_p13 = pnand %p2458_p9, %p2452_p6 }
  0x6f   : > { %551 = vperm.xlu1 %2319, %v541_v5   ;;  %v2845_v5 = vld [vmem:[#allocation5 + $0xe8] sm:$0xff] }
  0x73   : > { %546 = vperm.xlu1 %2319, %v540_v6   ;;  %v2848_v6 = vld [vmem:[#allocation5 + $0xe0] sm:$0xff] }
  0x77   : > { %567 = vperm.xlu1 %2319, %v564_v7   ;;  %v2851_v7 = vld [vmem:[#allocation5 + $0xd8] sm:$0xff] }
  0xe2   : > { %v2778_v21 = vpop.permute.xlu1 %574 }
  0xe3   : > { %vm576_vm2 = vcmp.eq.s32.totalorder %v2778_v21, 1 }
  0xe6   : > { %v2812_v28 = vpop.permute.xlu1 %561 }
  0xe7   : > { %3434 = vst [vmem:[#allocation19_spill] sm:$0xff] %v2812_v28 }
  0xe8   : > { %v579_v8 = vpop.xlane.xlu0 %578 }
  0xe9   : > { %v581_v9 = vmul.f32 0.0078125, %v579_v8  ;;  %v2857_v8 = vld [vmem:[#allocation5 + $0xc8] sm:$0xff] }
  0xea   : > { %v2814_v29 = vpop.permute.xlu1 %551 }
  0xeb   : > { %v582_v10 = vsub.f32 %v2737_v0, %v581_v9  ;;  %3435 = vst [vmem:[#allocation20_spill] sm:$0xff] %v2814_v29  ;;  %v2860_v9 = vld [vmem:[#allocation5 + $0xc0] sm:$0xff] }
  0xed   : > { %v583_v11 = vmul.f32 %v582_v10, %v582_v10 }
  0xee   : > { %v2817_v32 = vpop.permute.xlu1 %546 }
  0xef   : > { %584 = vadd.xlane.f32.xlu0 %v583_v11  ;;  %3436 = vst [vmem:[#allocation21_spill] sm:$0xff] %v2817_v32 }
  0xf2   : > { %v2834_v61 = vpop.permute.xlu1 %567 }
  0xf3   : > { %3437 = vst [vmem:[#allocation22_spill] sm:$0xff] %v2834_v61 }
 0x105   : > { %556 = vperm.xlu0 %2320, %v542_v13  }
 0x178   : > { %v585_v14 = vpop.xlane.xlu0 %584 }
 0x179   : > { %v586_v15 = vmul.f32 0.0078125, %v585_v14 }
 0x17b   : > { %v587_v16 = vadd.f32 1e-05, %v586_v15  ;;  %v2870_v15 = vld [vmem:[#allocation5 + $0xb8] sm:$0xff] }
 0x17d   : > { %2321 = vrsqrt.f32 %v587_v16  ;;  %v2873_v16 = vld [vmem:[#allocation5 + $0xb0] sm:$0xff] }
 0x180   : > { %v2820_v37 = vpop.permute.xlu0 %556 }
 0x18a   : > { %v2322_v17 = vpop.eup %2321 }
 0x18b   : > { %v589_v19 = vmul.f32 %v2322_v17, %v582_v10  ;;  %v2876_v17 = vld [vmem:[#allocation5 + $0xa8] sm:$0xff] }
 0x18d   : > { %v596_v22 = vmul.f32 %v2771_v18, %v589_v19  ;;  %v2879_v19 = vld [vmem:[#allocation5 + $0xa0] sm:$0xff] }
 0x18f   : > { %v603_v23 = vadd.f32 %v2776_v20, %v596_v22  ;;  %v2882_v22 = vld [vmem:[#allocation5 + $0x98] sm:$0xff] }
 0x191   : > { %2188 = vmatprep.subr.msk.mxu0 %vm576_vm2, %v603_v23 }
 0x192   : > { %2189 = vmatpush3.msk.msra.mxu0 %vm576_vm2, %v603_v23  ;;  %v2885_v23 = vld [vmem:[#allocation5 + $0x90] sm:$0xff] }
 0x193   : > { %2191 = vmatmul.mubr.msk.f32.vlgmr.msra.gmra.mxu0 %vm605_vm1, %v2786_v24  ;;  %866 = vmatprep.subr.mxu0 %v2841_v3 }
 0x194   : > { %2193 = vmatprep.mubr.msk.f32.mxu0 %vm605_vm1, %v2793_v25  ;;  %867 = vmatpush1.msra.mxu0 %v2843_v4 }
 0x195   : > { %868 = vmatprep.subr.mxu0 %v2845_v5 }
 0x196   : > { %869 = vmatpush1.msra.mxu0 %v2848_v6 }
 0x197   : > { %2194 = vmatmul.mubr.msk.f32.gmra.mxu0 %vm605_vm1, %v2804_v26  ;;  %870 = vmatprep.subr.mxu0 %v2851_v7 }
 0x198   : > { %930 = vmatprep.mubr.f32.mxu0 %v3334_v27 }
 0x253   : > { %v2192_v30 = vpop.f32.mrf.mxu0 }
 0x254   : > { %v690_v31 = vadd.f32 %v2192_v30, %v2814_v29  ;;  %v2888_v30 = vld [vmem:[#allocation5 + $0x88] sm:$0xff] }
 0x255   : > { %v684_v33 = vpop.f32.mrf.mxu0 }
 0x256   : > { %v685_v34 = vadd.f32 %v684_v33, %v2817_v32  ;;  %v708_v35 = vmul.f32 0.70710677, %v690_v31  ;;  %v704_v54 = vmul.f32 0.5, %v690_v31  ;;  %v2891_v31 = vld [vmem:[#allocation5 + $0x80] sm:$0xff]  ;;  %v2894_v33 = vld [vmem:[#allocation5 + $0x78] sm:$0xff] }
 0x257   : > { %v2195_v36 = vpop.f32.mrf.mxu0 }
 0x258   : > { %v700_v38 = vadd.f32 %v2195_v36, %v2812_v28  ;;  %v707_v39 = vmul.f32 0.70710677, %v685_v34  ;;  %2323 = verf.f32 %v708_v35  ;;  %v703_v57 = vmul.f32 0.5, %v685_v34  ;;  %v2897_v34 = vld [vmem:[#allocation5 + $0x70] sm:$0xff]  ;;  %v2900_v35 = vld [vmem:[#allocation5 + $0x68] sm:$0xff]  ;;  %v2903_v36 = vld [vmem:[#allocation5 + $0x60] sm:$0xff] }
 0x259   : > { %v694_v40 = vpop.f32.mrf.mxu0 }
 0x25a   : > { %v710_v41 = vmul.f32 0.70710677, %v700_v38  ;;  %v695_v42 = vadd.f32 %v694_v40, %v2820_v37  ;;  %v706_v47 = vmul.f32 0.5, %v700_v38  ;;  %v2906_v38 = vld [vmem:[#allocation5 + $0x58] sm:$0xff]  ;;  %v2912_v40 = vld [vmem:[#allocation5 + $0x48] sm:$0xff] }
 0x25c   : > { %2325 = verf.f32 %v710_v41  ;;  %v709_v43 = vmul.f32 0.70710677, %v695_v42  ;;  %v705_v50 = vmul.f32 0.5, %v695_v42  ;;  %v2915_v41 = vld [vmem:[#allocation5 + $0x40] sm:$0xff]  ;;  %v2918_v42 = vld [vmem:[#allocation5 + $0x38] sm:$0xff] }
 0x25d   : > { %2327 = verf.f32 %v707_v39  ;;  %v2909_v39 = vld [vmem:[#allocation5 + $0x50] sm:$0xff] }
 0x25e   : > { %2329 = verf.f32 %v709_v43  ;;  %v2921_v43 = vld [vmem:[#allocation5 + $0x30] sm:$0xff] }
 0x265   : > { %v2324_v44 = vpop.eup %2323 }
 0x266   : > { %v716_v53 = vadd.f32 1.0, %v2324_v44  ;;  %v2924_v44 = vld [vmem:[#allocation5 + $0x28] sm:$0xff] }
 0x268   : > { %v720_v58 = vmul.f32 %v716_v53, %v704_v54  ;;  %v2949_v53 = vld [vmem:[#allocation7 + $0x70] sm:$0xff]  ;;  %v2952_v54 = vld [vmem:[#allocation7 + $0xe8] sm:$0xff] }
 0x269   : > { %v2326_v45 = vpop.eup %2325  ;;  %3444 = vst [vmem:[#allocation29_spill] sm:$0xff] %v2949_v53  ;;  %3445 = vst [vmem:[#allocation30_spill] sm:$0xff] %v2952_v54 }
 0x26a   : > { %v2328_v46 = vpop.eup %2327  ;;  %v718_v48 = vadd.f32 1.0, %v2326_v45  ;;  %v2927_v45 = vld [vmem:[#allocation5 + $0x20] sm:$0xff] }
 0x26b   : > { %v2330_v49 = vpop.eup %2329  ;;  %v715_v56 = vadd.f32 1.0, %v2328_v46  ;;  %3439 = vst [vmem:[#allocation24_spill] sm:$0xff] %v2927_v45  ;;  %v2929_v46 = vld [vmem:[#allocation5 + $0x18] sm:$0xff] }
 0x26c   : > { %v722_v51 = vmul.f32 %v718_v48, %v706_v47  ;;  %v717_v52 = vadd.f32 1.0, %v2330_v49  ;;  %3440 = vst [vmem:[#allocation25_spill] sm:$0xff] %v2929_v46  ;;  %v2931_v47 = vld [vmem:[#allocation5 + $0x10] sm:$0xff]  ;;  %v2934_v48 = vld [vmem:[#allocation5 + $0x8] sm:$0xff]  ;;  %v2937_v49 = vld [vmem:[#allocation5] sm:$0xff] }
 0x26d   : > { %v719_v59 = vmul.f32 %v715_v56, %v703_v57  ;;  %3441 = vst [vmem:[#allocation26_spill] sm:$0xff] %v2931_v47  ;;  %3442 = vst [vmem:[#allocation27_spill] sm:$0xff] %v2934_v48 }
 0x26e   : > { %2197 = vmatpush3.msra.mxu1 %v722_v51  ;;  %v721_v55 = vmul.f32 %v717_v52, %v705_v50  ;;  %3443 = vst [vmem:[#allocation28_spill] sm:$0xff] %v2937_v49  ;;  %v2942_v50 = vld [vmem:[#allocation7 + $0xf8] sm:$0xff]  ;;  %v2946_v52 = vld [vmem:[#allocation7 + $0xf0] sm:$0xff] }
 0x26f   : > { %2198 = vmatprep.subr.mxu1 %v3334_v27  ;;  %v2944_v51 = vld [vmem:[#allocation7 + $0x78] sm:$0xff] }
 0x270   : > { %2199 = vmatpush3.msra.mxu1 %v721_v55  ;;  %v2955_v55 = vld [vmem:[#allocation7 + $0x68] sm:$0xff] }
 0x271   : > { %2200 = vmatprep.subr.mxu1 %v3334_v27  ;;  %3446 = vst [vmem:[#allocation31_spill] sm:$0xff] %v2955_v55 }
 0x272   : > { %2201 = vmatpush3.msra.mxu1 %v720_v58 }
 0x273   : > { %2202 = vmatprep.subr.mxu1 %v3334_v27  ;;  %v3002_v27 = vld [vmem:[#allocation7 + $0x40] sm:$0xff] }
 0x274   : > { %2203 = vmatpush3.msra.mxu1 %v719_v59  ;;  %3458 = vst [vmem:[#allocation43_spill] sm:$0xff] %v3002_v27  ;;  %v3513_v21 = vld [vmem:[#allocation26_spill] sm:$0xff] }
 0x275   : > { %2205 = vmatmul.mubr.msk.f32.vlgmr.msra.gmra.mxu1 %vm723_vm4, %v2829_v60  ;;  %2063 = vmatprep.subr.mxu1 %v2942_v50 }
 0x276   : > { %2064 = vmatpush3.msra.mxu1 %v2944_v51 }
 0x277   : > { %2065 = vmatprep.subr.mxu1 %v2946_v52 }
 0x278   : > { %2066 = vmatpush3.msra.mxu1 %v2949_v53 }
 0x279   : > { %2067 = vmatprep.subr.mxu1 %v2952_v54 }
 0x27a   : > { %2068 = vmatpush3.msra.mxu1 %v2955_v55 }
 0x335   : > { %v793_v62 = vpop.f32.mrf.mxu1 }
 0x336   : > { %v794_v63 = vadd.f32 %v793_v62, %v2834_v61  ;;  %v2963_v62 = vld [vmem:[%s3316_s8] ss:$0 sm:$0xff] }
 0x337   : > { %v2206_v1 = vpop.f32.mrf.mxu1  ;;  %3447 = vst [vmem:[#allocation32_spill] sm:$0xff] %v2963_v62  ;;  %v3014_v61 = vld [vmem:[#allocation7 + $0x30] sm:$0xff] }
 0x338   : > { %v2838_v2 = vadd.f32 %v794_v63, %v2737_v0  ;;  %v2854_v0 = vld [vmem:[#allocation5 + $0xd0] sm:$0xff]  ;;  %3462 = vst [vmem:[#allocation47_spill] sm:$0xff] %v3014_v61 }
 0x339   : > { %871 = vmatpush1.msra.mxu0 %v2854_v0  ;;  %v2969_v1 = vld [vmem:[%s3317_s9] ss:$0 sm:$0xff] }
 0x33a   : > { %798 = vadd.xlane.f32.xlu1 %v2838_v2  ;;  %872 = vmatprep.subr.mxu0 %v2857_v8  ;;  %3448 = vst [vmem:[#allocation33_spill] sm:$0xff] %v2969_v1 }
 0x33b   : > { %873 = vmatpush1.msra.mxu0 %v2860_v9 }
 0x33c   : > { %874 = vmatprep.subr.mxu0 %v2870_v15 }
 0x33d   : > { %875 = vmatpush1.msra.mxu0 %v2873_v16 }
 0x33e   : > { %876 = vmatprep.subr.mxu0 %v2876_v17 }
 0x33f   : > { %877 = vmatpush1.msra.mxu0 %v2879_v19 }
 0x340   : > { %878 = vmatprep.subr.mxu0 %v2882_v22 }
 0x341   : > { %879 = vmatpush1.msra.mxu0 %v2885_v23 }
 0x342   : > { %880 = vmatprep.subr.mxu0 %v2888_v30 }
 0x343   : > { %881 = vmatpush1.msra.mxu0 %v2891_v31 }
 0x344   : > { %882 = vmatprep.subr.mxu0 %v2894_v33 }
 0x345   : > { %883 = vmatpush1.msra.mxu0 %v2897_v34 }
 0x346   : > { %884 = vmatprep.subr.mxu0 %v2900_v35 }
 0x347   : > { %885 = vmatpush1.msra.mxu0 %v2903_v36 }
 0x348   : > { %886 = vmatprep.subr.mxu0 %v2906_v38 }
 0x349   : > { %887 = vmatpush1.msra.mxu0 %v2909_v39 }
 0x34a   : > { %888 = vmatprep.subr.mxu0 %v2912_v40 }
 0x34b   : > { %889 = vmatpush1.msra.mxu0 %v2915_v41 }
 0x34c   : > { %890 = vmatprep.subr.mxu0 %v2918_v42 }
 0x34d   : > { %891 = vmatpush1.msra.mxu0 %v2921_v43 }
 0x34e   : > { %892 = vmatprep.subr.mxu0 %v2924_v44 }
 0x34f   : > { %893 = vmatpush1.msra.mxu0 %v2927_v45 }
 0x350   : > { %894 = vmatprep.subr.mxu0 %v2929_v46 }
 0x351   : > { %895 = vmatpush1.msra.mxu0 %v2931_v47 }
 0x352   : > { %896 = vmatprep.subr.mxu0 %v2934_v48 }
 0x353   : > { %897 = vmatpush1.msra.mxu0 %v2937_v49 }
 0x3c3   : > { %v799_v10 = vpop.xlane.xlu1 %798 }
 0x3c4   : > { %v800_v11 = vmul.f32 0.0078125, %v799_v10 }
 0x3c6   : > { %v2866_v13 = vsub.f32 %v2838_v2, %v800_v11 }
 0x3c8   : > { %v802_v14 = vmul.f32 %v2866_v13, %v2866_v13 }
 0x3ca   : > { %803 = vadd.xlane.f32.xlu0 %v802_v14  ;;  %v2975_v14 = vld [vmem:[#allocation7 + $0xe0] sm:$0xff] }
 0x3cb   : > { %3449 = vst [vmem:[#allocation34_spill] sm:$0xff] %v2975_v14  ;;  %2069 = vmatprep.subr.mxu1 %v2975_v14 }
 0x453   : > { %v804_v56 = vpop.xlane.xlu0 %803 }
 0x454   : > { %v805_v57 = vmul.f32 0.0078125, %v804_v56  ;;  %v2978_v56 = vld [vmem:[#allocation7 + $0x60] sm:$0xff] }
 0x455   : > { %3450 = vst [vmem:[#allocation35_spill] sm:$0xff] %v2978_v56  ;;  %2070 = vmatpush3.msra.mxu1 %v2978_v56 }
 0x456   : > { %v806_v58 = vadd.f32 1e-05, %v805_v57  ;;  %v2984_v57 = vld [vmem:[#allocation7 + $0x58] sm:$0xff] }
 0x457   : > { %3452 = vst [vmem:[#allocation37_spill] sm:$0xff] %v2984_v57 }
 0x458   : > { %2331 = vrsqrt.f32 %v806_v58  ;;  %v2987_v58 = vld [vmem:[#allocation7 + $0xd0] sm:$0xff] }
 0x459   : > { %3453 = vst [vmem:[#allocation38_spill] sm:$0xff] %v2987_v58 }
 0x465   : > { %v2332_v59 = vpop.eup %2331 }
 0x466   : > { %v808_v63 = vmul.f32 %v2332_v59, %v2866_v13  ;;  %v2981_v13 = vld [vmem:[#allocation7 + $0xd8] sm:$0xff]  ;;  %v2990_v59 = vld [vmem:[#allocation7 + $0x50] sm:$0xff] }
 0x467   : > { %3451 = vst [vmem:[#allocation36_spill] sm:$0xff] %v2981_v13  ;;  %2071 = vmatprep.subr.mxu1 %v2981_v13  ;;  %3454 = vst [vmem:[#allocation39_spill] sm:$0xff] %v2990_v59 }
 0x468   : > { %v815_v10 = vmul.f32 %v2963_v62, %v808_v63  ;;  %2072 = vmatpush3.msra.mxu1 %v2984_v57  ;;  %v2993_v63 = vld [vmem:[#allocation7 + $0xc8] sm:$0xff]  ;;  %v3011_v62 = vld [vmem:[#allocation7 + $0xb0] sm:$0xff] }
 0x469   : > { %2073 = vmatprep.subr.mxu1 %v2987_v58  ;;  %3455 = vst [vmem:[#allocation40_spill] sm:$0xff] %v2993_v63  ;;  %3461 = vst [vmem:[#allocation46_spill] sm:$0xff] %v3011_v62 }
 0x46a   : > { %v822_v11 = vadd.f32 %v2969_v1, %v815_v10  ;;  %2074 = vmatpush3.msra.mxu1 %v2990_v59  ;;  %v2996_v10 = vld [vmem:[#allocation7 + $0x48] sm:$0xff]  ;;  %v3008_v1 = vld [vmem:[#allocation7 + $0x38] sm:$0xff] }
 0x46b   : > { %2075 = vmatprep.subr.mxu1 %v2993_v63  ;;  %3456 = vst [vmem:[#allocation41_spill] sm:$0xff] %v2996_v10  ;;  %3460 = vst [vmem:[#allocation45_spill] sm:$0xff] %v3008_v1  ;;  %v533_v63 = vld [vmem:[%s3319_s11] sm:$0x3] }
 0x46c   : > { %931 = vmatmul.mubr.f32.vlgmr.msra.gmra.mxu0 %v822_v11  ;;  %2076 = vmatpush3.msra.mxu1 %v2996_v10  ;;  %v2999_v11 = vld [vmem:[#allocation7 + $0xc0] sm:$0xff]  ;;  %v3043_v10 = vld [vmem:[#allocation7 + $0x8] sm:$0xff] }
 0x46d   : > { %2209 = vmatprep.mubr.msk.f32.mxu0 %vm605_vm1, %v2761_v12  ;;  %3457 = vst [vmem:[#allocation42_spill] sm:$0xff] %v2999_v11  ;;  %2077 = vmatprep.subr.mxu1 %v2999_v11  ;;  %v3005_v12 = vld [vmem:[#allocation7 + $0xb8] sm:$0xff]  ;;  %v3017_v11 = vld [vmem:[#allocation7 + $0xa8] sm:$0xff]  ;;  %3472 = vst [vmem:[#allocation57_spill] sm:$0xff] %v3043_v10 }
 0x46e   : > { %2078 = vmatpush3.msra.mxu1 %v3002_v27  ;;  %3459 = vst [vmem:[#allocation44_spill] sm:$0xff] %v3005_v12  ;;  %3463 = vst [vmem:[#allocation48_spill] sm:$0xff] %v3017_v11  ;;  %v3020_v27 = vld [vmem:[#allocation7 + $0x28] sm:$0xff] }
 0x46f   : > { %2079 = vmatprep.subr.mxu1 %v3005_v12  ;;  %3464 = vst [vmem:[#allocation49_spill] sm:$0xff] %v3020_v27  ;;  %v3023_v12 = vld [vmem:[#allocation7 + $0xa0] sm:$0xff] }
 0x470   : > { %2080 = vmatpush3.msra.mxu1 %v3008_v1  ;;  %3465 = vst [vmem:[#allocation50_spill] sm:$0xff] %v3023_v12  ;;  %v3026_v1 = vld [vmem:[#allocation7 + $0x20] sm:$0xff] }
 0x471   : > { %2081 = vmatprep.subr.mxu1 %v3011_v62  ;;  %3466 = vst [vmem:[#allocation51_spill] sm:$0xff] %v3026_v1  ;;  %v3029_v62 = vld [vmem:[#allocation7 + $0x98] sm:$0xff] }
 0x472   : > { %2082 = vmatpush3.msra.mxu1 %v3014_v61  ;;  %3467 = vst [vmem:[#allocation52_spill] sm:$0xff] %v3029_v62  ;;  %v3032_v61 = vld [vmem:[#allocation7 + $0x18] sm:$0xff] }
 0x473   : > { %2083 = vmatprep.subr.mxu1 %v3017_v11  ;;  %3468 = vst [vmem:[#allocation53_spill] sm:$0xff] %v3032_v61  ;;  %v3035_v11 = vld [vmem:[#allocation7 + $0x90] sm:$0xff] }
 0x474   : > { %2084 = vmatpush3.msra.mxu1 %v3020_v27  ;;  %3469 = vst [vmem:[#allocation54_spill] sm:$0xff] %v3035_v11  ;;  %v3038_v27 = vld [vmem:[#allocation7 + $0x10] sm:$0xff] }
 0x475   : > { %2085 = vmatprep.subr.mxu1 %v3023_v12  ;;  %3470 = vst [vmem:[#allocation55_spill] sm:$0xff] %v3038_v27  ;;  %v3041_v12 = vld [vmem:[#allocation7 + $0x88] sm:$0xff] }
 0x476   : > { %2086 = vmatpush3.msra.mxu1 %v3026_v1  ;;  %3471 = vst [vmem:[#allocation56_spill] sm:$0xff] %v3041_v12  ;;  %v3045_v1 = vld [vmem:[#allocation7 + $0x80] sm:$0xff] }
 0x477   : > { %2087 = vmatprep.subr.mxu1 %v3029_v62  ;;  %3473 = vst [vmem:[#allocation58_spill] sm:$0xff] %v3045_v1  ;;  %v3048_v62 = vld [vmem:[#allocation7] sm:$0xff] }
 0x478   : > { %2088 = vmatpush3.msra.mxu1 %v3032_v61  ;;  %3474 = vst [vmem:[#allocation59_spill] sm:$0xff] %v3048_v62 }
 0x479   : > { %2089 = vmatprep.subr.mxu1 %v3035_v11  ;;  %v856_v11 = vlaneseq }
 0x47a   : > { %2090 = vmatpush3.msra.mxu1 %v3038_v27 }
 0x47b   : > { %2091 = vmatprep.subr.mxu1 %v3041_v12  ;;  %v857_v27 = vshrl.u32 %v856_v11, 7 }
 0x47c   : > { %2092 = vmatpush3.msra.mxu1 %v3043_v10 }
 0x47d   : > { %2093 = vmatprep.subr.mxu1 %v3045_v1  ;;  %v858_v61 = vsub.s32 0, %v857_v27  ;;  %v862_v59 = vsub.s32 1, %v857_v27 }
 0x47e   : > { %2094 = vmatpush3.msra.mxu1 %v3048_v62 }
 0x47f   : > { %1292 = vmatprep.subr.mxu1 %v2841_v3  ;;  %v3057_v58 = vrot.slane %v533_v63, %v858_v61  ;;  %v3059_v12 = vrot.slane %v533_v63, %v862_v59 }
 0x481   : > { %3475 = vst [vmem:[#allocation60_spill] sm:$0xff] %v3057_v58 }
 0x52c   : > { %v932_v57 = vpop.f32.mrf.mxu0 }
 0x52d   : > { %v933_v10 = vadd.f32 %v932_v57, %v3057_v58  ;;  %v3476_v57 = vmov 0.0  }
 0x52e   : > { %v934_v1 = vpop.f32.mrf.mxu0 }
 0x52f   : > { %v939_v13 = vmul.f32 0.70710677, %v933_v10  ;;  %v935_v62 = vadd.f32 %v934_v1, %v3059_v12  ;;  %v937_v27 = vmul.f32 0.5, %v933_v10 }
 0x531   : > { %2333 = verf.f32 %v939_v13  ;;  %v940_v3 = vmul.f32 0.70710677, %v935_v62  ;;  %v938_v55 = vmul.f32 0.5, %v935_v62 }
 0x533   : > { %2335 = verf.f32 %v940_v3 }
 0x53e   : > { %v2334_v11 = vpop.eup %2333 }
 0x53f   : > { %v943_v14 = vadd.f32 1.0, %v2334_v11 }
 0x540   : > { %v2336_v56 = vpop.eup %2335 }
 0x541   : > { %v944_v54 = vadd.f32 1.0, %v2336_v56  ;;  %v945_v53 = vmul.f32 %v943_v14, %v937_v27 }
 0x543   : > { %v946_v61 = vmul.f32 %v944_v54, %v938_v55  ;;  %v3099_v55 = vld [vmem:[%s3321_s13] ss:$0 sm:$0xff] }
 0x545   : > { %1043 = vmatprep.mubr.f32.mxu1 %v946_v61 }
 0x546   : > { %1044 = vmatmul.mubr.f32.vlgmr.msra.gmra.mxu1 %v945_v53 }
 0x547   : > { %1293 = vmatpush1.msra.mxu1 %v2843_v4  ;;  %1356 = vmatprep.mubr.f32.mxu1 %v3476_v57 }
 0x548   : > { %1294 = vmatprep.subr.mxu1 %v2845_v5 }
 0x549   : > { %1295 = vmatpush1.msra.mxu1 %v2848_v6 }
 0x54a   : > { %1296 = vmatprep.subr.mxu1 %v2851_v7 }
 0x54b   : > { %1297 = vmatpush1.msra.mxu1 %v2854_v0 }
 0x54c   : > { %1298 = vmatprep.subr.mxu1 %v2857_v8 }
 0x54d   : > { %1299 = vmatpush1.msra.mxu1 %v2860_v9 }
 0x54e   : > { %1300 = vmatprep.subr.mxu1 %v2870_v15 }
 0x54f   : > { %1301 = vmatpush1.msra.mxu1 %v2873_v16 }
 0x550   : > { %1302 = vmatprep.subr.mxu1 %v2876_v17 }
 0x551   : > { %1303 = vmatpush1.msra.mxu1 %v2879_v19 }
 0x552   : > { %1304 = vmatprep.subr.mxu1 %v2882_v22 }
 0x553   : > { %1305 = vmatpush1.msra.mxu1 %v2885_v23 }
 0x554   : > { %1306 = vmatprep.subr.mxu1 %v2888_v30 }
 0x555   : > { %1307 = vmatpush1.msra.mxu1 %v2891_v31 }
 0x556   : > { %1308 = vmatprep.subr.mxu1 %v2894_v33 }
 0x557   : > { %1309 = vmatpush1.msra.mxu1 %v2897_v34 }
 0x558   : > { %1310 = vmatprep.subr.mxu1 %v2900_v35 }
 0x559   : > { %1311 = vmatpush1.msra.mxu1 %v2903_v36 }
 0x55a   : > { %1312 = vmatprep.subr.mxu1 %v2906_v38 }
 0x55b   : > { %1313 = vmatpush1.msra.mxu1 %v2909_v39 }
 0x55c   : > { %1314 = vmatprep.subr.mxu1 %v2912_v40 }
 0x55d   : > { %1315 = vmatpush1.msra.mxu1 %v2915_v41 }
 0x55e   : > { %1316 = vmatprep.subr.mxu1 %v2918_v42 }
 0x55f   : > { %1317 = vmatpush1.msra.mxu1 %v2921_v43 }
 0x560   : > { %1318 = vmatprep.subr.mxu1 %v2924_v44 }
 0x561   : > { %1319 = vmatpush1.msra.mxu1 %v2927_v45 }
 0x562   : > { %1320 = vmatprep.subr.mxu1 %v2929_v46 }
 0x563   : > { %1321 = vmatpush1.msra.mxu1 %v2931_v47 }
 0x564   : > { %1322 = vmatprep.subr.mxu1 %v2934_v48 }
 0x565   : > { %1323 = vmatpush1.msra.mxu1 %v2937_v49 }
 0x566   : > { %2234 = vmatprep.subr.mxu1 %v3476_v57 }
 0x606   : > { %v2095_v3 = vpop.f32.mrf.mxu1 }
 0x608   : > { %v2096_v53 = vpop.f32.mrf.mxu1 }
 0x609   : > { %v2097_v54 = vadd.f32 %v2096_v53, %v2095_v3 }
 0x60b   : > { %v1049_v62 = vadd.f32 %v2097_v54, %v2838_v2 }
 0x60d   : > { %v3103_v1 = vadd.f32 %v3099_v55, %v1049_v62 }
 0x60f   : > { %1057 = vadd.xlane.f32.xlu1 %v3103_v1 }
 0x698   : > { %v1058_v14 = vpop.xlane.xlu1 %1057 }
 0x699   : > { %v1059_v56 = vmul.f32 0.0078125, %v1058_v14 }
 0x69b   : > { %v1060_v13 = vsub.f32 %v3103_v1, %v1059_v56 }
 0x69d   : > { %v1061_v59 = vmul.f32 %v1060_v13, %v1060_v13 }
 0x69f   : > { %1062 = vadd.xlane.f32.xlu1 %v1061_v59 }
 0x728   : > { %v1063_v63 = vpop.xlane.xlu1 %1062 }
 0x729   : > { %v1064_v10 = vmul.f32 0.0078125, %v1063_v63 }
 0x72b   : > { %v1065_v11 = vadd.f32 1e-05, %v1064_v10 }
 0x72d   : > { %2337 = vrsqrt.f32 %v1065_v11 }
 0x73a   : > { %v2338_v27 = vpop.eup %2337 }
 0x73b   : > { %v1067_v61 = vmul.f32 %v2338_v27, %v1060_v13 }
 0x73d   : > { %v1068_v3 = vmul.f32 %v2771_v18, %v1067_v61 }
 0x73f   : > { %v1069_v2 = vadd.f32 %v2776_v20, %v1068_v3 }
 0x741   : > { %2207 = vmatprep.subr.msk.mxu0 %vm576_vm2, %v1069_v2 }
 0x742   : > { %2208 = vmatpush3.msk.msra.mxu0 %vm576_vm2, %v1069_v2 }
 0x743   : > { %2210 = vmatmul.mubr.msk.f32.vlgmr.msra.gmra.mxu0 %vm605_vm1, %v2786_v24  ;;  %2215 = vmatprep.subr.mxu0 %v3476_v57 }
 0x744   : > { %2212 = vmatprep.mubr.msk.f32.mxu0 %vm605_vm1, %v2793_v25 }
 0x747   : > { %2213 = vmatmul.mubr.msk.f32.gmra.mxu0 %vm605_vm1, %v2804_v26 }
 0x748   : > { %2223 = vmatprep.mubr.msk.f32.mxu0 %vm2528_vm3, %v3476_v57 }
 0x803   : > { %v2211_v53 = vpop.f32.mrf.mxu0 }
 0x804   : > { %v1143_v54 = vadd.f32 %v2211_v53, %v2814_v29 }
 0x805   : > { %v1137_v62 = vpop.f32.mrf.mxu0 }
 0x806   : > { %v1138_v14 = vadd.f32 %v1137_v62, %v2817_v32  ;;  %v1161_v56 = vmul.f32 0.70710677, %v1143_v54 }
 0x807   : > { %v2214_v13 = vpop.f32.mrf.mxu0 }
 0x808   : > { %v1153_v59 = vadd.f32 %v2214_v13, %v2812_v28  ;;  %v1160_v63 = vmul.f32 0.70710677, %v1138_v14  ;;  %2339 = verf.f32 %v1161_v56  ;;  %v1157_v28 = vmul.f32 0.5, %v1143_v54  ;;  %v3485_v54 = vld [vmem:[#allocation39_spill] sm:$0xff] }
 0x809   : > { %v1147_v10 = vpop.f32.mrf.mxu0 }
 0x80a   : > { %v1163_v11 = vmul.f32 0.70710677, %v1153_v59  ;;  %v1148_v27 = vadd.f32 %v1147_v10, %v2820_v37  ;;  %v1159_v29 = vmul.f32 0.5, %v1153_v59  ;;  %v1156_v10 = vmul.f32 0.5, %v1138_v14  ;;  %v3486_v14 = vld [vmem:[#allocation40_spill] sm:$0xff]  ;;  %v3487_v59 = vld [vmem:[#allocation41_spill] sm:$0xff] }
 0x80c   : > { %2341 = verf.f32 %v1163_v11  ;;  %v1162_v61 = vmul.f32 0.70710677, %v1148_v27  ;;  %v1158_v47 = vmul.f32 0.5, %v1148_v27  ;;  %v3488_v11 = vld [vmem:[#allocation42_spill] sm:$0xff]  ;;  %v3489_v27 = vld [vmem:[#allocation43_spill] sm:$0xff] }
 0x80d   : > { %2343 = verf.f32 %v1160_v63 }
 0x80e   : > { %2345 = verf.f32 %v1162_v61  ;;  %v3490_v61 = vld [vmem:[#allocation44_spill] sm:$0xff] }
 0x815   : > { %v2340_v3 = vpop.eup %2339 }
 0x816   : > { %v1169_v32 = vadd.f32 1.0, %v2340_v3  ;;  %v3491_v3 = vld [vmem:[#allocation45_spill] sm:$0xff] }
 0x818   : > { %v1173_v56 = vmul.f32 %v1169_v32, %v1157_v28  ;;  %v3478_v28 = vld [vmem:[#allocation30_spill] sm:$0xff]  ;;  %v3479_v32 = vld [vmem:[#allocation31_spill] sm:$0xff] }
 0x819   : > { %v2342_v2 = vpop.eup %2341 }
 0x81a   : > { %v2344_v53 = vpop.eup %2343  ;;  %v1171_v49 = vadd.f32 1.0, %v2342_v2  ;;  %v3492_v2 = vld [vmem:[#allocation46_spill] sm:$0xff] }
 0x81b   : > { %v2346_v62 = vpop.eup %2345  ;;  %v1168_v46 = vadd.f32 1.0, %v2344_v53  ;;  %v3493_v53 = vld [vmem:[#allocation47_spill] sm:$0xff] }
 0x81c   : > { %v1175_v48 = vmul.f32 %v1171_v49, %v1159_v29  ;;  %v1170_v13 = vadd.f32 1.0, %v2346_v62  ;;  %v3477_v29 = vld [vmem:[#allocation29_spill] sm:$0xff]  ;;  %v3484_v49 = vld [vmem:[#allocation38_spill] sm:$0xff]  ;;  %v3494_v62 = vld [vmem:[#allocation48_spill] sm:$0xff] }
 0x81d   : > { %v1172_v63 = vmul.f32 %v1168_v46, %v1156_v10  ;;  %v3481_v46 = vld [vmem:[#allocation35_spill] sm:$0xff] }
 0x81e   : > { %v1174_v45 = vmul.f32 %v1170_v13, %v1158_v47  ;;  %2216 = vmatpush3.msra.mxu0 %v1175_v48  ;;  %v3482_v47 = vld [vmem:[#allocation36_spill] sm:$0xff]  ;;  %v3483_v48 = vld [vmem:[#allocation37_spill] sm:$0xff]  ;;  %v3497_v10 = vld [vmem:[#allocation51_spill] sm:$0xff] }
 0x81f   : > { %2217 = vmatprep.subr.mxu0 %v3476_v57  ;;  %v3495_v13 = vld [vmem:[#allocation49_spill] sm:$0xff] }
 0x820   : > { %2218 = vmatpush3.msra.mxu0 %v1174_v45  ;;  %v3480_v45 = vld [vmem:[#allocation34_spill] sm:$0xff] }
 0x821   : > { %2219 = vmatprep.subr.mxu0 %v3476_v57 }
 0x822   : > { %2220 = vmatpush3.msra.mxu0 %v1173_v56  ;;  %v3496_v56 = vld [vmem:[#allocation50_spill] sm:$0xff] }
 0x823   : > { %2221 = vmatprep.subr.mxu0 %v3476_v57 }
 0x824   : > { %2222 = vmatpush3.msra.mxu0 %v1172_v63  ;;  %v3498_v63 = vld [vmem:[#allocation52_spill] sm:$0xff] }
 0x825   : > { %2224 = vmatmul.mubr.msk.f32.vlgmr.msra.gmra.mxu0 %vm723_vm4, %v2829_v60  ;;  %2108 = vmatprep.subr.mxu0 %v2942_v50 }
 0x826   : > { %2109 = vmatpush3.msra.mxu0 %v2944_v51 }
 0x827   : > { %2110 = vmatprep.subr.mxu0 %v2946_v52 }
 0x828   : > { %2111 = vmatpush3.msra.mxu0 %v3477_v29 }
 0x829   : > { %2112 = vmatprep.subr.mxu0 %v3478_v28 }
 0x82a   : > { %2113 = vmatpush3.msra.mxu0 %v3479_v32 }
 0x82b   : > { %2114 = vmatprep.subr.mxu0 %v3480_v45 }
 0x82c   : > { %2115 = vmatpush3.msra.mxu0 %v3481_v46 }
 0x82d   : > { %2116 = vmatprep.subr.mxu0 %v3482_v47  ;;  %v3508_v47 = vld [vmem:[#allocation33_spill] sm:$0xff] }
 0x82e   : > { %2117 = vmatpush3.msra.mxu0 %v3483_v48  ;;  %v3507_v48 = vld [vmem:[#allocation32_spill] sm:$0xff] }
 0x82f   : > { %2118 = vmatprep.subr.mxu0 %v3484_v49 }
 0x830   : > { %2119 = vmatpush3.msra.mxu0 %v3485_v54 }
 0x831   : > { %2120 = vmatprep.subr.mxu0 %v3486_v14 }
 0x832   : > { %2121 = vmatpush3.msra.mxu0 %v3487_v59 }
 0x833   : > { %2122 = vmatprep.subr.mxu0 %v3488_v11  ;;  %v3499_v11 = vld [vmem:[#allocation53_spill] sm:$0xff] }
 0x834   : > { %2123 = vmatpush3.msra.mxu0 %v3489_v27  ;;  %v3500_v27 = vld [vmem:[#allocation54_spill] sm:$0xff] }
 0x835   : > { %2124 = vmatprep.subr.mxu0 %v3490_v61  ;;  %v3501_v61 = vld [vmem:[#allocation55_spill] sm:$0xff] }
 0x836   : > { %2125 = vmatpush3.msra.mxu0 %v3491_v3  ;;  %v3502_v3 = vld [vmem:[#allocation56_spill] sm:$0xff] }
 0x837   : > { %2126 = vmatprep.subr.mxu0 %v3492_v2  ;;  %v3503_v2 = vld [vmem:[#allocation57_spill] sm:$0xff] }
 0x838   : > { %2127 = vmatpush3.msra.mxu0 %v3493_v53  ;;  %v3504_v53 = vld [vmem:[#allocation58_spill] sm:$0xff] }
 0x839   : > { %2128 = vmatprep.subr.mxu0 %v3494_v62  ;;  %v3505_v62 = vld [vmem:[#allocation59_spill] sm:$0xff] }
 0x83a   : > { %2129 = vmatpush3.msra.mxu0 %v3495_v13 }
 0x83b   : > { %2130 = vmatprep.subr.mxu0 %v3496_v56  ;;  %v3506_v56 = vld [vmem:[#allocation22_spill] sm:$0xff] }
 0x83c   : > { %2131 = vmatpush3.msra.mxu0 %v3497_v10 }
 0x83d   : > { %2132 = vmatprep.subr.mxu0 %v3498_v63 }
 0x83e   : > { %2133 = vmatpush3.msra.mxu0 %v3499_v11 }
 0x83f   : > { %2134 = vmatprep.subr.mxu0 %v3500_v27 }
 0x840   : > { %2135 = vmatpush3.msra.mxu0 %v3501_v61 }
 0x841   : > { %2136 = vmatprep.subr.mxu0 %v3502_v3 }
 0x842   : > { %2137 = vmatpush3.msra.mxu0 %v3503_v2 }
 0x843   : > { %2138 = vmatprep.subr.mxu0 %v3504_v53 }
 0x844   : > { %2139 = vmatpush3.msra.mxu0 %v3505_v62 }
 0x8e5   : > { %v1242_v13 = vpop.f32.mrf.mxu0 }
 0x8e6   : > { %v1243_v59 = vadd.f32 %v1242_v13, %v3506_v56 }
 0x8e7   : > { %v2225_v10 = vpop.f32.mrf.mxu0 }
 0x8e8   : > { %v1246_v63 = vadd.f32 %v1243_v59, %v3103_v1  ;;  %v3509_v10 = vld [vmem:[#allocation18_spill] sm:$0xff] }
 0x8ea   : > { %1247 = vadd.xlane.f32.xlu1 %v1246_v63 }
 0x973   : > { %v1248_v11 = vpop.xlane.xlu1 %1247 }
 0x974   : > { %v1249_v14 = vmul.f32 0.0078125, %v1248_v11 }
 0x976   : > { %v1250_v27 = vsub.f32 %v1246_v63, %v1249_v14 }
 0x978   : > { %v1251_v54 = vmul.f32 %v1250_v27, %v1250_v27 }
 0x97a   : > { %1252 = vadd.xlane.f32.xlu1 %v1251_v54 }
 0xa03   : > { %v1253_v61 = vpop.xlane.xlu1 %1252 }
 0xa04   : > { %v1254_v3 = vmul.f32 0.0078125, %v1253_v61 }
 0xa06   : > { %v1255_v49 = vadd.f32 1e-05, %v1254_v3 }
 0xa08   : > { %2347 = vrsqrt.f32 %v1255_v49 }
 0xa15   : > { %v2348_v2 = vpop.eup %2347 }
 0xa16   : > { %v1257_v53 = vmul.f32 %v2348_v2, %v1250_v27 }
 0xa18   : > { %v1258_v62 = vmul.f32 %v3507_v48, %v1257_v53 }
 0xa1a   : > { %v1259_v46 = vadd.f32 %v3508_v47, %v1258_v62 }
 0xa1c   : > { %1357 = vmatmul.mubr.f32.vlgmr.msra.gmra.mxu1 %v1259_v46 }
 0xa1d   : > { %2242 = vmatprep.mubr.msk.f32.mxu1 %vm2528_vm3, %v3476_v57 }
 0xadc   : > { %v1358_v1 = vpop.f32.mrf.mxu1 }
 0xadd   : > { %v1359_v59 = vadd.f32 %v1358_v1, %v3057_v58 }
 0xade   : > { %v1360_v14 = vpop.f32.mrf.mxu1 }
 0xadf   : > { %v1365_v11 = vmul.f32 0.70710677, %v1359_v59  ;;  %v1361_v54 = vadd.f32 %v1360_v14, %v3059_v12  ;;  %v1363_v62 = vmul.f32 0.5, %v1359_v59 }
 0xae1   : > { %2349 = verf.f32 %v1365_v11  ;;  %v1366_v61 = vmul.f32 0.70710677, %v1361_v54  ;;  %v1364_v2 = vmul.f32 0.5, %v1361_v54 }
 0xae3   : > { %2351 = verf.f32 %v1366_v61 }
 0xaee   : > { %v2350_v49 = vpop.eup %2349 }
 0xaef   : > { %v1369_v3 = vadd.f32 1.0, %v2350_v49 }
 0xaf0   : > { %v2352_v27 = vpop.eup %2351 }
 0xaf1   : > { %v1370_v53 = vadd.f32 1.0, %v2352_v27  ;;  %v1371_v13 = vmul.f32 %v1369_v3, %v1363_v62 }
 0xaf3   : > { %v1372_v46 = vmul.f32 %v1370_v53, %v1364_v2 }
 0xaf5   : > { %1469 = vmatprep.mubr.f32.mxu0 %v1372_v46 }
 0xaf6   : > { %1470 = vmatmul.mubr.f32.vlgmr.msra.gmra.mxu0 %v1371_v13 }
 0xaf7   : > { %2228 = vmatprep.mubr.msk.f32.mxu0 %vm605_vm1, %v3509_v10 }
 0xbb6   : > { %v2140_v1 = vpop.f32.mrf.mxu0 }
 0xbb8   : > { %v2141_v58 = vpop.f32.mrf.mxu0 }
 0xbb9   : > { %v2142_v47 = vadd.f32 %v2141_v58, %v2140_v1  ;;  %v3519_v1 = vld [vmem:[#allocation35_spill] sm:$0xff] }
 0xbbb   : > { %v1475_v14 = vadd.f32 %v2142_v47, %v1246_v63  ;;  %v3510_v63 = vld [vmem:[#allocation23_spill] sm:$0xff] }
 0xbbd   : > { %v3174_v11 = vadd.f32 %v3099_v55, %v1475_v14  ;;  %v3521_v14 = vld [vmem:[#allocation37_spill] sm:$0xff] }
 0xbbf   : > { %1477 = vadd.xlane.f32.xlu1 %v3174_v11 }
 0xc48   : > { %v1478_v61 = vpop.xlane.xlu1 %1477 }
 0xc49   : > { %v1479_v54 = vmul.f32 0.0078125, %v1478_v61  ;;  %v3530_v61 = vld [vmem:[#allocation46_spill] sm:$0xff] }
 0xc4b   : > { %v1480_v59 = vsub.f32 %v3174_v11, %v1479_v54  ;;  %v3531_v54 = vld [vmem:[#allocation47_spill] sm:$0xff] }
 0xc4d   : > { %v1481_v49 = vmul.f32 %v1480_v59, %v1480_v59 }
 0xc4f   : > { %1482 = vadd.xlane.f32.xlu1 %v1481_v49  ;;  %v3533_v49 = vld [vmem:[#allocation49_spill] sm:$0xff] }
 0xcd8   : > { %v1483_v27 = vpop.xlane.xlu1 %1482 }
 0xcd9   : > { %v1484_v3 = vmul.f32 0.0078125, %v1483_v27  ;;  %v3534_v27 = vld [vmem:[#allocation50_spill] sm:$0xff] }
 0xcdb   : > { %v1485_v2 = vadd.f32 1e-05, %v1484_v3  ;;  %v3535_v3 = vld [vmem:[#allocation51_spill] sm:$0xff] }
 0xcdd   : > { %2353 = vrsqrt.f32 %v1485_v2  ;;  %v3536_v2 = vld [vmem:[#allocation52_spill] sm:$0xff] }
 0xcea   : > { %v2354_v53 = vpop.eup %2353 }
 0xceb   : > { %v1487_v62 = vmul.f32 %v2354_v53, %v1480_v59  ;;  %v3532_v59 = vld [vmem:[#allocation48_spill] sm:$0xff]  ;;  %v3537_v53 = vld [vmem:[#allocation53_spill] sm:$0xff] }
 0xced   : > { %v1488_v58 = vmul.f32 %v2771_v18, %v1487_v62  ;;  %v3511_v18 = vld [vmem:[#allocation24_spill] sm:$0xff]  ;;  %v3538_v62 = vld [vmem:[#allocation54_spill] sm:$0xff] }
 0xcef   : > { %v1489_v47 = vadd.f32 %v2776_v20, %v1488_v58  ;;  %v3512_v20 = vld [vmem:[#allocation25_spill] sm:$0xff]  ;;  %v3539_v58 = vld [vmem:[#allocation55_spill] sm:$0xff] }
 0xcf1   : > { %2226 = vmatprep.subr.msk.mxu0 %vm576_vm2, %v1489_v47 }
 0xcf2   : > { %2227 = vmatpush3.msk.msra.mxu0 %vm576_vm2, %v1489_v47  ;;  %v3540_v47 = vld [vmem:[#allocation56_spill] sm:$0xff] }
 0xcf3   : > { %2229 = vmatmul.mubr.msk.f32.vlgmr.msra.gmra.mxu0 %vm605_vm1, %v2786_v24  ;;  %1712 = vmatprep.subr.mxu0 %v3510_v63  ;;  %v3514_v24 = vld [vmem:[#allocation27_spill] sm:$0xff]  ;;  %v3541_v63 = vld [vmem:[#allocation57_spill] sm:$0xff] }
 0xcf4   : > { %2231 = vmatprep.mubr.msk.f32.mxu0 %vm605_vm1, %v2793_v25  ;;  %1713 = vmatpush1.msra.mxu0 %v2843_v4  ;;  %v3515_v25 = vld [vmem:[#allocation28_spill] sm:$0xff] }
 0xcf5   : > { %1714 = vmatprep.subr.mxu0 %v2845_v5  ;;  %v3516_v4 = vld [vmem:[#allocation20_spill] sm:$0xff] }
 0xcf6   : > { %1715 = vmatpush1.msra.mxu0 %v2848_v6 }
 0xcf7   : > { %2232 = vmatmul.mubr.msk.f32.gmra.mxu0 %vm605_vm1, %v2804_v26  ;;  %1716 = vmatprep.subr.mxu0 %v2851_v7  ;;  %v3517_v7 = vld [vmem:[#allocation21_spill] sm:$0xff] }
 0xcf8   : > { %1717 = vmatpush1.msra.mxu0 %v2854_v0  ;;  %1776 = vmatprep.mubr.f32.mxu0 %v3476_v57 }
 0xcf9   : > { %1718 = vmatprep.subr.mxu0 %v2857_v8 }
 0xcfa   : > { %1719 = vmatpush1.msra.mxu0 %v2860_v9 }
 0xcfb   : > { %1720 = vmatprep.subr.mxu0 %v2870_v15  ;;  %v3518_v15 = vld [vmem:[#allocation19_spill] sm:$0xff] }
 0xcfc   : > { %1721 = vmatpush1.msra.mxu0 %v2873_v16 }
 0xcfd   : > { %1722 = vmatprep.subr.mxu0 %v2876_v17 }
 0xcfe   : > { %1723 = vmatpush1.msra.mxu0 %v2879_v19 }
 0xcff   : > { %1724 = vmatprep.subr.mxu0 %v2882_v22 }
 0xd00   : > { %1725 = vmatpush1.msra.mxu0 %v2885_v23 }
 0xd01   : > { %1726 = vmatprep.subr.mxu0 %v2888_v30 }
 0xd02   : > { %1727 = vmatpush1.msra.mxu0 %v2891_v31 }
 0xd03   : > { %1728 = vmatprep.subr.mxu0 %v2894_v33 }
 0xd04   : > { %1729 = vmatpush1.msra.mxu0 %v2897_v34 }
 0xd05   : > { %1730 = vmatprep.subr.mxu0 %v2900_v35 }
 0xd06   : > { %1731 = vmatpush1.msra.mxu0 %v2903_v36 }
 0xd07   : > { %1732 = vmatprep.subr.mxu0 %v2906_v38 }
 0xd08   : > { %1733 = vmatpush1.msra.mxu0 %v2909_v39 }
 0xd09   : > { %1734 = vmatprep.subr.mxu0 %v2912_v40 }
 0xd0a   : > { %1735 = vmatpush1.msra.mxu0 %v2915_v41 }
 0xd0b   : > { %1736 = vmatprep.subr.mxu0 %v2918_v42 }
 0xd0c   : > { %1737 = vmatpush1.msra.mxu0 %v2921_v43 }
 0xd0d   : > { %1738 = vmatprep.subr.mxu0 %v2924_v44 }
 0xd0e   : > { %1739 = vmatpush1.msra.mxu0 %v3511_v18  ;;  %v3542_v18 = vld [vmem:[#allocation58_spill] sm:$0xff] }
 0xd0f   : > { %1740 = vmatprep.subr.mxu0 %v3512_v20  ;;  %v3543_v20 = vld [vmem:[#allocation59_spill] sm:$0xff] }
 0xd10   : > { %1741 = vmatpush1.msra.mxu0 %v3513_v21 }
 0xd11   : > { %1742 = vmatprep.subr.mxu0 %v3514_v24 }
 0xd12   : > { %1743 = vmatpush1.msra.mxu0 %v3515_v25 }
 0xdb3   : > { %v2230_v26 = vpop.f32.mrf.mxu0 }
 0xdb4   : > { %v1563_v5 = vadd.f32 %v2230_v26, %v3516_v4 }
 0xdb5   : > { %v1557_v6 = vpop.f32.mrf.mxu0 }
 0xdb6   : > { %v1558_v0 = vadd.f32 %v1557_v6, %v3517_v7  ;;  %v1581_v8 = vmul.f32 0.70710677, %v1563_v5  ;;  %v1577_v43 = vmul.f32 0.5, %v1563_v5 }
 0xdb7   : > { %v2233_v9 = vpop.f32.mrf.mxu0 }
 0xdb8   : > { %v1573_v16 = vadd.f32 %v2233_v9, %v3518_v15  ;;  %v1580_v17 = vmul.f32 0.70710677, %v1558_v0  ;;  %2355 = verf.f32 %v1581_v8  ;;  %v1576_v13 = vmul.f32 0.5, %v1558_v0 }
 0xdb9   : > { %v1567_v19 = vpop.f32.mrf.mxu0 }
 0xdba   : > { %v1583_v22 = vmul.f32 0.70710677, %v1573_v16  ;;  %v1568_v23 = vadd.f32 %v1567_v19, %v2820_v37  ;;  %v1579_v35 = vmul.f32 0.5, %v1573_v16  ;;  %v3544_v19 = vld [vmem:[#allocation33_spill] sm:$0xff] }
 0xdbc   : > { %2357 = verf.f32 %v1583_v22  ;;  %v1582_v30 = vmul.f32 0.70710677, %v1568_v23  ;;  %v1578_v41 = vmul.f32 0.5, %v1568_v23  ;;  %v3545_v23 = vld [vmem:[#allocation60_spill] sm:$0xff] }
 0xdbd   : > { %2359 = verf.f32 %v1580_v17 }
 0xdbe   : > { %2361 = verf.f32 %v1582_v30 }
 0xdc5   : > { %v2356_v31 = vpop.eup %2355 }
 0xdc6   : > { %v1589_v39 = vadd.f32 1.0, %v2356_v31 }
 0xdc8   : > { %v1593_v37 = vmul.f32 %v1589_v39, %v1577_v43 }
 0xdc9   : > { %v2358_v33 = vpop.eup %2357 }
 0xdca   : > { %v2360_v34 = vpop.eup %2359  ;;  %v1591_v36 = vadd.f32 1.0, %v2358_v33 }
 0xdcb   : > { %v2362_v38 = vpop.eup %2361  ;;  %v1588_v44 = vadd.f32 1.0, %v2360_v34 }
 0xdcc   : > { %v1595_v40 = vmul.f32 %v1591_v36, %v1579_v35  ;;  %v1590_v42 = vadd.f32 1.0, %v2362_v38 }
 0xdcd   : > { %v1592_v10 = vmul.f32 %v1588_v44, %v1576_v13 }
 0xdce   : > { %v1594_v46 = vmul.f32 %v1590_v42, %v1578_v41  ;;  %2235 = vmatpush3.msra.mxu1 %v1595_v40 }
 0xdcf   : > { %2236 = vmatprep.subr.mxu1 %v3476_v57 }
 0xdd0   : > { %2237 = vmatpush3.msra.mxu1 %v1594_v46 }
 0xdd1   : > { %2238 = vmatprep.subr.mxu1 %v3476_v57 }
 0xdd2   : > { %2239 = vmatpush3.msra.mxu1 %v1593_v37 }
 0xdd3   : > { %2240 = vmatprep.subr.mxu1 %v3476_v57  ;;  %v3520_v57 = vld [vmem:[#allocation36_spill] sm:$0xff] }
 0xdd4   : > { %2241 = vmatpush3.msra.mxu1 %v1592_v10 }
 0xdd5   : > { %2243 = vmatmul.mubr.msk.f32.vlgmr.msra.gmra.mxu1 %vm723_vm4, %v2829_v60  ;;  %2153 = vmatprep.subr.mxu1 %v2942_v50  ;;  %v3522_v60 = vld [vmem:[#allocation38_spill] sm:$0xff]  ;;  %v3523_v50 = vld [vmem:[#allocation39_spill] sm:$0xff] }
 0xdd6   : > { %2154 = vmatpush3.msra.mxu1 %v2944_v51  ;;  %v3524_v51 = vld [vmem:[#allocation40_spill] sm:$0xff] }
 0xdd7   : > { %2155 = vmatprep.subr.mxu1 %v2946_v52  ;;  %v3525_v52 = vld [vmem:[#allocation41_spill] sm:$0xff] }
 0xdd8   : > { %2156 = vmatpush3.msra.mxu1 %v3477_v29  ;;  %v3526_v29 = vld [vmem:[#allocation42_spill] sm:$0xff] }
 0xdd9   : > { %2157 = vmatprep.subr.mxu1 %v3478_v28  ;;  %v3527_v28 = vld [vmem:[#allocation43_spill] sm:$0xff] }
 0xdda   : > { %2158 = vmatpush3.msra.mxu1 %v3479_v32  ;;  %v3528_v32 = vld [vmem:[#allocation44_spill] sm:$0xff] }
 0xddb   : > { %2159 = vmatprep.subr.mxu1 %v3480_v45  ;;  %v3529_v45 = vld [vmem:[#allocation45_spill] sm:$0xff] }
 0xddc   : > { %2160 = vmatpush3.msra.mxu1 %v3519_v1 }
 0xddd   : > { %2161 = vmatprep.subr.mxu1 %v3520_v57 }
 0xdde   : > { %2162 = vmatpush3.msra.mxu1 %v3521_v14 }
 0xddf   : > { %2163 = vmatprep.subr.mxu1 %v3522_v60 }
 0xde0   : > { %2164 = vmatpush3.msra.mxu1 %v3523_v50 }
 0xde1   : > { %2165 = vmatprep.subr.mxu1 %v3524_v51 }
 0xde2   : > { %2166 = vmatpush3.msra.mxu1 %v3525_v52 }
 0xde3   : > { %2167 = vmatprep.subr.mxu1 %v3526_v29 }
 0xde4   : > { %2168 = vmatpush3.msra.mxu1 %v3527_v28 }
 0xde5   : > { %2169 = vmatprep.subr.mxu1 %v3528_v32 }
 0xde6   : > { %2170 = vmatpush3.msra.mxu1 %v3529_v45 }
 0xde7   : > { %2171 = vmatprep.subr.mxu1 %v3530_v61 }
 0xde8   : > { %2172 = vmatpush3.msra.mxu1 %v3531_v54 }
 0xde9   : > { %2173 = vmatprep.subr.mxu1 %v3532_v59 }
 0xdea   : > { %2174 = vmatpush3.msra.mxu1 %v3533_v49 }
 0xdeb   : > { %2175 = vmatprep.subr.mxu1 %v3534_v27 }
 0xdec   : > { %2176 = vmatpush3.msra.mxu1 %v3535_v3 }
 0xded   : > { %2177 = vmatprep.subr.mxu1 %v3536_v2 }
 0xdee   : > { %2178 = vmatpush3.msra.mxu1 %v3537_v53 }
 0xdef   : > { %2179 = vmatprep.subr.mxu1 %v3538_v62 }
 0xdf0   : > { %2180 = vmatpush3.msra.mxu1 %v3539_v58 }
 0xdf1   : > { %2181 = vmatprep.subr.mxu1 %v3540_v47 }
 0xdf2   : > { %2182 = vmatpush3.msra.mxu1 %v3541_v63 }
 0xdf3   : > { %2183 = vmatprep.subr.mxu1 %v3542_v18 }
 0xdf4   : > { %2184 = vmatpush3.msra.mxu1 %v3543_v20 }
 0xe95   : > { %v1662_v21 = vpop.f32.mrf.mxu1 }
 0xe96   : > { %v1663_v24 = vadd.f32 %v1662_v21, %v3506_v56 }
 0xe97   : > { %v2244_v25 = vpop.f32.mrf.mxu1 }
 0xe98   : > { %v1666_v26 = vadd.f32 %v1663_v24, %v3174_v11 }
 0xe9a   : > { %1667 = vadd.xlane.f32.xlu1 %v1666_v26 }
 0xf23   : > { %v1668_v4 = vpop.xlane.xlu1 %1667 }
 0xf24   : > { %v1669_v5 = vmul.f32 0.0078125, %v1668_v4 }
 0xf26   : > { %v1670_v6 = vsub.f32 %v1666_v26, %v1669_v5 }
 0xf28   : > { %v1671_v7 = vmul.f32 %v1670_v6, %v1670_v6 }
 0xf2a   : > { %1672 = vadd.xlane.f32.xlu0 %v1671_v7 }
 0xfb3   : > { %v1673_v0 = vpop.xlane.xlu0 %1672 }
 0xfb4   : > { %v1674_v8 = vmul.f32 0.0078125, %v1673_v0 }
 0xfb6   : > { %v1675_v9 = vadd.f32 1e-05, %v1674_v8 }
 0xfb8   : > { %2363 = vrsqrt.f32 %v1675_v9 }
 0xfc5   : > { %v2364_v15 = vpop.eup %2363 }
 0xfc6   : > { %v1677_v16 = vmul.f32 %v2364_v15, %v1670_v6 }
 0xfc8   : > { %v1678_v17 = vmul.f32 %v3507_v48, %v1677_v16 }
 0xfca   : > { %v1679_v22 = vadd.f32 %v3544_v19, %v1678_v17 }
 0xfcc   : > { %1777 = vmatmul.mubr.f32.vlgmr.msra.gmra.mxu0 %v1679_v22 }
0x108c   : > { %v1778_v56 = vpop.f32.mrf.mxu0 }
0x108d   : > { %v1779_v11 = vadd.f32 %v1778_v56, %v3545_v23 }
0x108e   : > { %v1780_v30 = vpop.f32.mrf.mxu0 }
0x108f   : > { %v1785_v31 = vmul.f32 0.70710677, %v1779_v11  ;;  %v1781_v33 = vadd.f32 %v1780_v30, %v3059_v12  ;;  %v1783_v40 = vmul.f32 0.5, %v1779_v11 }
0x1091   : > { %2365 = verf.f32 %v1785_v31  ;;  %v1786_v34 = vmul.f32 0.70710677, %v1781_v33  ;;  %v1784_v39 = vmul.f32 0.5, %v1781_v33 }
0x1093   : > { %2367 = verf.f32 %v1786_v34 }
0x109e   : > { %v2366_v35 = vpop.eup %2365 }
0x109f   : > { %v1789_v38 = vadd.f32 1.0, %v2366_v35 }
0x10a0   : > { %v2368_v36 = vpop.eup %2367 }
0x10a1   : > { %v1790_v48 = vadd.f32 1.0, %v2368_v36  ;;  %v1791_v42 = vmul.f32 %v1789_v38, %v1783_v40 }
0x10a3   : > { %v1792_v41 = vmul.f32 %v1790_v48, %v1784_v39 }
0x10a5   : > { %1889 = vmatprep.mubr.f32.mxu1 %v1792_v41 }
0x10a6   : > { %1890 = vmatmul.mubr.f32.vlgmr.msra.gmra.mxu1 %v1791_v42 }
0x1166   : > { %v2185_v43 = vpop.f32.mrf.mxu1 }
0x1168   : > { %v2186_v44 = vpop.f32.mrf.mxu1 }
0x1169   : > { %v2187_v12 = vadd.f32 %v2186_v44, %v2185_v43 }
0x116b   : > { %v1895_v46 = vadd.f32 %v2187_v12, %v1666_v26 }
0x116d   : > { %v1896_v37 = vadd.f32 %v3099_v55, %v1895_v46 }
0x116f   : > { %1897 = vst [vmem:[%s524_s22] sm:$0xff] %v1896_v37 }
0x1170   : > { %2462 = shalt.err (!%p2459_p13)
}
0x1171   : > { %s2463_s25 = scalar_lea.hbm %s1910_s12, 128  ;;  %s2467_s27 = scalar_lea.hbm %s3546_s10, 256 }
0x1172   : > { %p2464_p5 = scmp.ne.s32.totalorder %s1910_s12, %s2463_s25  ;;  %p2468_p8 = scmp.lt.s32.totalorder %s1910_s12, %s3546_s10 }
0x1173   : > { %p2469_p7 = scmp.lt.s32.totalorder %s2467_s27, %s2463_s25 }
0x1174   : > { %p2465_p10 = pnand %p2464_p5, %p3547_p1 }
0x1175   : > { %p2470_p11 = por %p2469_p7, %p2468_p8 }
0x1176   : > { %p2466_p4 = pneg %p2465_p10 }
0x1178   : > { %p2471_p0 = pnand %p2470_p11, %p2466_p4 }
0x117a   : > { %2474 = shalt.err (!%p2471_p0)
}
0x117b   : > { %2255 = dma.vmem_to_hbm [thread:$0]  (%p3547_p1), %s1913_s24, 128, %s1910_s12, %s1899_s19  }
0x117c PF: > { %s3548_s22 = sld [smem:[#allocation12_spill]] }
0x117d   : > { %s3549_s16 = sld [smem:[#allocation15_spill]] }
0x117e   : > { %s3550_s14 = sld [smem:[#allocation14_spill]] }
0x1182   : > { %s1924_s21 = sand.u32 1, %s3548_s22  }
0x1183   : > { %p3551_p2 = scmp.ne.s32.totalorder %s3549_s16, 0  ;;  %s1925_s20 = scalar_lea.sflag [#allocation4], %s1924_s21 }
0x1184   : > { %p3552_p6 = scmp.ge.s32.totalorder %s3550_s14, 2 }
0x1186   : > { %p2269_p12 = pnand %p3552_p6, %p3551_p2 }
0x1188   : > { %p2270_p3 = pneg %p2269_p12 }
0x118a   : > { %2500 = dma.done.wait (%p2270_p3), %s1925_s20, 128  }
0x118b   : > { %2502 = vsyncadd (%p2270_p3), %s1925_s20, 4294967168  ;;  %s3553_s16 = sld [smem:[#allocation16_spill]]  ;;  %s3556_s29 = smov %s2509_s30 }
0x118c   : > { %s3554_s17 = sld [smem:[#allocation13_spill]] }
0x118d   : > { %s3555_s15 = sld [smem:[#allocation17_spill]] }
0x1191   : > { %p28_p9 = scmp.ge.s32.totalorder %s3553_s16, 4  }
0x1192   : > { %s3557_s30 = smov %s3554_s17 }
0x1193   :  { %30 = sbr.rel (!%p28_p9) target bundleno = 10 (0xa), region = 132 }
0x1198   :  { %1930 = vsyncpa [#allocation3], 1 }
0x1199   :  { %1932 = vsyncpa [#allocation3 + $0x1], 1 }
0x119a   :  { %1933 = vsyncpa [#allocation6], 1 }
0x119b   :  { %1934 = vsyncpa [#allocation4], 1 }
0x119c   :  { %1936 = vsyncpa [#allocation4 + $0x1], 1 }

</bundles_post_ra>
